<compile_context>
chip_gen: v7x
topology: tpu7x:2x2x1
jax: 0.10.0
libtpu: 0.0.40
codegen_flags: <defaults>
</compile_context>

<pallas_src>
import functools

import jax
import jax.numpy as jnp
from jax import lax
from jax.experimental import pallas as pl
from jax.experimental.pallas import tpu as pltpu


# ----------------------------------------------------------------------------
# Helpers
# ----------------------------------------------------------------------------

def _fold_bn(gamma, beta, mean, var, eps=1e-5):
    scale = gamma / jnp.sqrt(var + eps)
    bias = beta - mean * scale
    return scale, bias


def _pick_th(Ho, Wo, target_rows=1024):
    """Pick an output-row tile height TH that divides Ho.

    Targets ~1024 matmul rows per tile; requires the flat output block
    (TH*Wo) to be sublane-aligned (multiple of 8) unless TH == Ho.
    Prefers >1 tile (pipelining / megacore) when each tile keeps >=64 rows.
    """
    divs = [d for d in range(1, Ho + 1) if Ho % d == 0]
    ok = [d for d in divs if d == Ho or (d * Wo) % 8 == 0]
    cands = [d for d in ok if d < Ho and d * Wo >= 64] or ok
    return min(cands, key=lambda d: (abs(d * Wo - target_rows), -d))


def _vmem_limit_bytes():
    # ~3/4 of physical VMEM, capped at 96 MiB (v5e/v6e: 128 MiB, v7x: 64 MiB).
    try:
        cap = pltpu.get_tpu_info().vmem_capacity_bytes
    except Exception:
        cap = 64 << 20
    return int(min(96 << 20, max(32 << 20, cap * 3 // 4)))


# ----------------------------------------------------------------------------
# Fused bottleneck kernel
# ----------------------------------------------------------------------------

def _bottleneck_kernel(x_ref, w1_ref, w2_ref, w3_ref, b1_ref, b2_ref, b3_ref,
                       *rest, s1, s2, TH, T, W1, Wo, pb, has_ds):
    # Ref layout (set up by the wrapper):
    #   x_ref : (H, W, Cin)        one input image (batch dim squeezed), bf16
    #   w1_ref: (Cin, width)       BN1 scale folded in, bf16
    #   w2_ref: (9, width, width)  tap = 3*ky + kx, BN2 scale folded, bf16
    #   w3_ref: (width, out_ch)    BN3 scale folded in, bf16
    #   b*_ref: (1, C)             folded BN biases, f32
    #   [wds_ref: (Cin, out_ch), bds_ref: (1, out_ch)]   (downsample branch)
    #   o_ref : (TH*Wo, out_ch)    flat, lane-dense output row tile, bf16
    #   h1_scr: (nall, W1+2, width) zero-padded per-tile conv1 output, bf16
    if has_ds:
        wds_ref, bds_ref, o_ref, h1_scr = rest
    else:
        o_ref, h1_scr = rest

    t = pl.program_id(1)
    Cin = x_ref.shape[-1]
    width = w1_ref.shape[1]
    out_ch = w3_ref.shape[1]
    nall = s2 * (TH - 1) + 3          # padded-h1 rows needed by this tile
    rb = s2 * t * TH                  # first padded-h1 row of the window

    zrow = jnp.zeros((1, W1 + 2, width), h1_scr.dtype)
    zcol = jnp.zeros((nall, 1, width), h1_scr.dtype)

    def stage1(u_start, dst, n_valid):
        # conv1 (1x1, stride s1) + BN + ReLU for h1 rows
        # [u_start, u_start + n_valid), stored into scratch rows
        # [dst, dst + n_valid) at column offset 1 (2-row halo recompute).
        nx = s1 * (n_valid - 1) + 1
        xs = x_ref[pl.ds(s1 * u_start, nx), :, :]
        if s1 > 1:
            xs = xs[::s1, ::s1, :]                       # (n_valid, W1, Cin)
        h1 = jnp.dot(xs.reshape(n_valid * W1, Cin), w1_ref[...],
                     preferred_element_type=jnp.float32)
        h1 = jnp.maximum(h1 + b1_ref[...], 0.0)
        # NOTE: h1 is kept as bf16 between stages (double rounding vs f32 ref).
        h1_scr[dst:dst + n_valid, 1:W1 + 1, :] = (
            h1.reshape(n_valid, W1, width).astype(h1_scr.dtype))

    # ---- stage 1: per-tile conv1 into a small zero-padded scratch.
    # Zero only the thin pad border, never the whole buffer.
    h1_scr[:, 0:1, :] = zcol
    h1_scr[:, W1 + 1:W1 + 2, :] = zcol

    if T == 1:
        h1_scr[0:1, :, :] = zrow
        if pb > 0:
            h1_scr[nall - pb:nall, :, :] = jnp.zeros((pb, W1 + 2, width),
                                                     h1_scr.dtype)
        stage1(0, 1, nall - 1 - pb)
    else:
        @pl.when(t == 0)
        def _():
            h1_scr[0:1, :, :] = zrow
            stage1(0, 1, nall - 1)

        if pb == 0:
            @pl.when(t > 0)
            def _():
                stage1(rb - 1, 0, nall)
        else:
            if T > 2:
                @pl.when(jnp.logical_and(t > 0, t < T - 1))
                def _():
                    stage1(rb - 1, 0, nall)

            @pl.when(t == T - 1)
            def _():
                h1_scr[nall - pb:nall, :, :] = jnp.zeros((pb, W1 + 2, width),
                                                         h1_scr.dtype)
                stage1(rb - 1, 0, nall - pb)

    # ---- stage 2: 3x3 conv (padding already materialized) + BN + ReLU.
    rows_all = h1_scr[...]                               # (nall, W1+2, width)

    if s2 == 1:
        def tap(ky, kx):
            return rows_all[ky:ky + TH, kx:kx + Wo, :]
    elif s2 == 2:
        # Even/odd precompute: 4 parity copies instead of 9+ strided slices.
        # TODO(synk): strided (s2>1) paths are not exercised by the self-test.
        par = ((rows_all[0::2, 0::2, :], rows_all[0::2, 1::2, :]),
               (rows_all[1::2, 0::2, :], rows_all[1::2, 1::2, :]))

        def tap(ky, kx):
            a = par[ky % 2][kx % 2]
            return a[ky // 2:ky // 2 + TH, kx // 2:kx // 2 + Wo, :]
    else:
        def tap(ky, kx):
            r = rows_all[ky:ky + s2 * (TH - 1) + 1:s2]
            return r[:, kx:kx + s2 * (Wo - 1) + 1:s2, :]

    acc2 = jnp.zeros((TH * Wo, width), jnp.float32)
    for ky in range(3):
        for kx in range(3):
            acc2 = acc2 + jnp.dot(tap(ky, kx).reshape(TH * Wo, width),
                                  w2_ref[3 * ky + kx],
                                  preferred_element_type=jnp.float32)
    h2 = jnp.maximum(acc2 + b2_ref[...], 0.0).astype(jnp.bfloat16)

    # ---- stage 3: 1x1 conv + BN, residual / downsample add (f32), final ReLU.
    acc3 = jnp.dot(h2, w3_ref[...],
                   preferred_element_type=jnp.float32) + b3_ref[...]

    stride = s1 * s2
    if has_ds:
        nxr = stride * (TH - 1) + 1
        xr = x_ref[pl.ds(stride * t * TH, nxr), :, :]
        if stride > 1:
            xr = xr[::stride, ::stride, :]               # (TH, Wo, Cin)
        res = jnp.dot(xr.reshape(TH * Wo, Cin), wds_ref[...],
                      preferred_element_type=jnp.float32) + bds_ref[...]
    else:
        # identity shortcut: stride == 1 and Cin == out_ch; add in f32.
        xr = x_ref[pl.ds(t * TH, TH), :, :]              # (TH, Wo, out_ch)
        res = xr.reshape(TH * Wo, out_ch).astype(jnp.float32)

    o_ref[...] = jnp.maximum(acc3 + res, 0.0).astype(o_ref.dtype)


# ----------------------------------------------------------------------------
# Wrappers (NHWC fast path + NCHW compatibility)
# ----------------------------------------------------------------------------

def bottleneck_forward_pallas(x, params, *, stride=1, stride_in_1x1=False):
    """Fused Pallas Bottleneck forward.  NHWC in, NHWC out (bf16), eval BN."""
    if x.dtype != jnp.bfloat16:
        x = x.astype(jnp.bfloat16)     # halve input DMA bytes / VMEM footprint
    N, H, W, Cin = x.shape
    s1 = stride if stride_in_1x1 else 1
    s2 = 1 if stride_in_1x1 else stride
    width = params["wc1"].shape[0]
    out_ch = params["wc3"].shape[0]
    H1 = (H - 1) // s1 + 1
    W1 = (W - 1) // s1 + 1
    Ho = (H1 - 1) // s2 + 1
    Wo = (W1 - 1) // s2 + 1
    TH = _pick_th(Ho, Wo)
    T = Ho // TH
    nall = s2 * (TH - 1) + 3
    pb = max(0, s2 * (Ho - 1) + 2 - H1)   # static bottom-pad rows (last tile)

    sc1, b1 = _fold_bn(*params["bn1"])
    sc2, b2 = _fold_bn(*params["bn2"])
    sc3, b3 = _fold_bn(*params["bn3"])

    # Fold BN scales into the conv weights (kernel only adds the bias) and
    # pre-cast weights to bf16 for the MXU; accumulation stays f32 in-kernel.
    w1 = (params["wc1"][:, :, 0, 0].T * sc1[None, :]).astype(jnp.bfloat16)
    w2 = jnp.transpose(params["wc2"], (2, 3, 1, 0)) * sc2[None, None, None, :]
    w2 = w2.reshape(9, width, width).astype(jnp.bfloat16)   # tap = 3*ky + kx
    w3 = (params["wc3"][:, :, 0, 0].T * sc3[None, :]).astype(jnp.bfloat16)

    has_ds = "wcds" in params
    args = [x, w1, w2, w3,
            b1.reshape(1, width).astype(jnp.float32),
            b2.reshape(1, width).astype(jnp.float32),
            b3.reshape(1, out_ch).astype(jnp.float32)]
    in_specs = [
        # TODO(synk): per-row-tile x window for very large maps on v7x.
        pl.BlockSpec((None, H, W, Cin), lambda n, t: (n, 0, 0, 0)),
        pl.BlockSpec((Cin, width), lambda n, t: (0, 0)),
        pl.BlockSpec((9, width, width), lambda n, t: (0, 0, 0)),
        pl.BlockSpec((width, out_ch), lambda n, t: (0, 0)),
        pl.BlockSpec((1, width), lambda n, t: (0, 0)),
        pl.BlockSpec((1, width), lambda n, t: (0, 0)),
        pl.BlockSpec((1, out_ch), lambda n, t: (0, 0)),
    ]
    if has_ds:
        scd, bd = _fold_bn(*params["bnds"])
        wds = (params["wcds"][:, :, 0, 0].T * scd[None, :]).astype(jnp.bfloat16)
        args += [wds, bd.reshape(1, out_ch).astype(jnp.float32)]
        in_specs += [pl.BlockSpec((Cin, out_ch), lambda n, t: (0, 0)),
                     pl.BlockSpec((1, out_ch), lambda n, t: (0, 0))]

    kernel = functools.partial(_bottleneck_kernel, s1=s1, s2=s2, TH=TH, T=T,
                               W1=W1, Wo=Wo, pb=pb, has_ds=has_ds)

    # Flat (Ho*Wo) output => lane-dense, unmasked 2-D stores in-kernel.
    out_flat = pl.pallas_call(
        kernel,
        out_shape=jax.ShapeDtypeStruct((N, Ho * Wo, out_ch), jnp.bfloat16),
        grid_spec=pltpu.PrefetchScalarGridSpec(
            num_scalar_prefetch=0,
            grid=(N, T),
            in_specs=in_specs,
            out_specs=pl.BlockSpec((None, TH * Wo, out_ch),
                                   lambda n, t: (n, t, 0)),
            scratch_shapes=[pltpu.VMEM((nall, W1 + 2, width), jnp.bfloat16)],
        ),
        compiler_params=pltpu.CompilerParams(
            # No state carried across grid steps -> both axes megacore-safe.
            dimension_semantics=("parallel", "parallel"),
            vmem_limit_bytes=_vmem_limit_bytes()),
    )(*args)

    return out_flat.reshape(N, Ho, Wo, out_ch)


def bottleneck_forward_pallas_nchw(x_nchw, params, *, stride=1,
                                   stride_in_1x1=False):
    """PyTorch-layout compatibility wrapper.  Prefer the NHWC entry point:
    each transpose is a full HBM read+write pass of the activation."""
    x = jnp.transpose(x_nchw, (0, 2, 3, 1))
    out = bottleneck_forward_pallas(x, params, stride=stride,
                                    stride_in_1x1=stride_in_1x1)
    return jnp.transpose(out, (0, 3, 1, 2))


# ----------------------------------------------------------------------------
# Parameter init (PyTorch layouts) and pure-JAX reference (NCHW, as the spec)
# ----------------------------------------------------------------------------

def init_bottleneck_params(key, in_planes, planes, *, stride=1, groups=1,
                           base_width=64):
    assert groups == 1, "only groups=1 supported"
    expansion = 4
    width = int(planes * (base_width / 64.0)) * groups
    out_ch = expansion * planes
    ks = jax.random.split(key, 8)

    def bn_params(k, c):
        k1, k2, k3, k4 = jax.random.split(k, 4)
        gamma = 1.0 + 0.1 * jax.random.normal(k1, (c,), jnp.float32)
        beta = 0.1 * jax.random.normal(k2, (c,), jnp.float32)
        mean = 0.1 * jax.random.normal(k3, (c,), jnp.float32)
        var = jax.random.uniform(k4, (c,), jnp.float32, 0.5, 1.5)
        return gamma, beta, mean, var

    p = {
        # PyTorch conv weight layout: (Cout, Cin, kh, kw)
        "wc1": 0.1 * jax.random.normal(ks[0], (width, in_planes, 1, 1), jnp.float32),
        "wc2": 0.1 * jax.random.normal(ks[1], (width, width, 3, 3), jnp.float32),
        "wc3": 0.1 * jax.random.normal(ks[2], (out_ch, width, 1, 1), jnp.float32),
        "bn1": bn_params(ks[3], width),
        "bn2": bn_params(ks[4], width),
        "bn3": bn_params(ks[5], out_ch),
    }
    if stride != 1 or in_planes != out_ch:
        p["wcds"] = 0.1 * jax.random.normal(ks[6], (out_ch, in_planes, 1, 1),
                                            jnp.float32)
        p["bnds"] = bn_params(ks[7], out_ch)
    return p


def _ref_conv(x, w, stride, padding):
    return lax.conv_general_dilated(
        x, w, (stride, stride), padding,
        dimension_numbers=("NCHW", "OIHW", "NCHW"))


def _ref_bn(x, bn, eps=1e-5):
    gamma, beta, mean, var = bn
    sh = (1, -1, 1, 1)
    return (x - mean.reshape(sh)) / jnp.sqrt(var.reshape(sh) + eps) \
        * gamma.reshape(sh) + beta.reshape(sh)


def bottleneck_forward_ref(x, params, *, stride=1, stride_in_1x1=False):
    s1 = stride if stride_in_1x1 else 1
    s2 = 1 if stride_in_1x1 else stride
    out = jax.nn.relu(_ref_bn(_ref_conv(x, params["wc1"], s1, "VALID"),
                              params["bn1"]))
    out = jax.nn.relu(_ref_bn(_ref_conv(out, params["wc2"], s2,
                                        [(1, 1), (1, 1)]), params["bn2"]))
    out = _ref_bn(_ref_conv(out, params["wc3"], 1, "VALID"), params["bn3"])
    if "wcds" in params:
        shortcut = _ref_bn(_ref_conv(x, params["wcds"], stride, "VALID"),
                           params["bnds"])
    else:
        shortcut = x
    return jax.nn.relu(out + shortcut)


# ----------------------------------------------------------------------------
# Main
# ----------------------------------------------------------------------------

if __name__ == "__main__":
    def run_case(key, *, N, in_planes, planes, H, W, stride):
        kx, kp = jax.random.split(key)
        x_nhwc = jax.random.normal(kx, (N, H, W, in_planes), jnp.float32)
        params = init_bottleneck_params(kp, in_planes, planes, stride=stride)

        out = jax.block_until_ready(
            bottleneck_forward_pallas(x_nhwc, params, stride=stride))

        # Reference follows the PyTorch NCHW module exactly; transposes live
        # only in the test harness, not on the Pallas path.
        x_nchw = jnp.transpose(x_nhwc, (0, 3, 1, 2))
        ref = bottleneck_forward_ref(x_nchw, params, stride=stride)
        ref = jnp.transpose(ref, (0, 2, 3, 1))
        ref = jax.block_until_ready(ref)

        Ho = (H - 1) // stride + 1
        Wo = (W - 1) // stride + 1
        assert out.shape == (N, Ho, Wo, 4 * planes), out.shape
        outf = out.astype(jnp.float32)
        err = jnp.max(jnp.abs(outf - ref))
        # bf16 activations/weights on the MXU (f32 accumulate) and bf16
        # intermediate/output stores -> loosened tolerance.
        assert jnp.allclose(outf, ref, rtol=5e-2, atol=5e-2), \
            f"max abs err {err}"

    key = jax.random.PRNGKey(0)
    k1, k2 = jax.random.split(key)
    # Case 1: channel-expanding block -> projection (downsample) shortcut.
    run_case(k1, N=2, in_planes=16, planes=8, H=16, W=16, stride=1)
    # Case 2: in_planes == 4*planes, stride 1 -> identity shortcut.
    run_case(k2, N=2, in_planes=32, planes=8, H=16, W=16, stride=1)

    print("KERNEL_OK")
</pallas_src>

<mosaic_0001>
module attributes {stable_mosaic.version = 11 : i64} {
  func.func @_bottleneck_kernel(%arg0: i32, %arg1: i32, %arg2: memref<1x16x16x16xbf16, #tpu.memory_space<vmem>>, %arg3: memref<16x8xbf16, #tpu.memory_space<vmem>>, %arg4: memref<9x8x8xbf16, #tpu.memory_space<vmem>>, %arg5: memref<8x32xbf16, #tpu.memory_space<vmem>>, %arg6: memref<1x8xf32, #tpu.memory_space<vmem>>, %arg7: memref<1x8xf32, #tpu.memory_space<vmem>>, %arg8: memref<1x32xf32, #tpu.memory_space<vmem>>, %arg9: memref<16x32xbf16, #tpu.memory_space<vmem>>, %arg10: memref<1x32xf32, #tpu.memory_space<vmem>>, %arg11: memref<1x128x32xbf16, #tpu.memory_space<vmem>>, %arg12: memref<10x18x8xbf16, #tpu.memory_space<vmem>>) attributes {dimension_semantics = [#tpu.dimension_semantics<parallel>, #tpu.dimension_semantics<parallel>], iteration_bounds = array<i64: 2, 2>, scalar_prefetch = 0 : i64, scratch_operands = 1 : i64, tpu.core_type = #tpu.core_type<tc>, window_params = [{transform_indices = @transform_0, window_bounds = array<i64: 1, 16, 16, 16>}, {pipeline_mode = #tpu.pipeline_mode<synchronous>, transform_indices = @transform_1, window_bounds = array<i64: 16, 8>}, {pipeline_mode = #tpu.pipeline_mode<synchronous>, transform_indices = @transform_2, window_bounds = array<i64: 9, 8, 8>}, {pipeline_mode = #tpu.pipeline_mode<synchronous>, transform_indices = @transform_3, window_bounds = array<i64: 8, 32>}, {pipeline_mode = #tpu.pipeline_mode<synchronous>, transform_indices = @transform_4, window_bounds = array<i64: 1, 8>}, {pipeline_mode = #tpu.pipeline_mode<synchronous>, transform_indices = @transform_5, window_bounds = array<i64: 1, 8>}, {pipeline_mode = #tpu.pipeline_mode<synchronous>, transform_indices = @transform_6, window_bounds = array<i64: 1, 32>}, {pipeline_mode = #tpu.pipeline_mode<synchronous>, transform_indices = @transform_7, window_bounds = array<i64: 16, 32>}, {pipeline_mode = #tpu.pipeline_mode<synchronous>, transform_indices = @transform_8, window_bounds = array<i64: 1, 32>}, {transform_indices = @transform_9, window_bounds = array<i64: 1, 128, 32>}]} {
    %c1_i32 = arith.constant 1 : i32
    %0 = arith.muli %c1_i32, %arg1 : i32
    %c8_i32 = arith.constant 8 : i32
    %1 = arith.muli %0, %c8_i32 : i32
    %cst = arith.constant 0.000000e+00 : bf16
    %2 = vector.broadcast %cst : bf16 to vector<1x18x8xbf16>
    %cst_0 = arith.constant 0.000000e+00 : bf16
    %3 = vector.broadcast %cst_0 : bf16 to vector<10x1x8xbf16>
    %c0 = arith.constant 0 : index
    %c0_1 = arith.constant 0 : index
    %c0_2 = arith.constant 0 : index
    %4 = vector.load %arg12[%c0, %c0_1, %c0_2] : memref<10x18x8xbf16, #tpu.memory_space<vmem>>, vector<10x1x8xbf16>
    tpu.vector_store %arg12[%c0, %c0_1, %c0_2], %3 {strides = array<i32>} : memref<10x18x8xbf16, #tpu.memory_space<vmem>>, vector<10x1x8xbf16>,
    %c0_3 = arith.constant 0 : index
    %c17 = arith.constant 17 : index
    %c0_4 = arith.constant 0 : index
    %5 = vector.load %arg12[%c0_3, %c17, %c0_4] : memref<10x18x8xbf16, #tpu.memory_space<vmem>>, vector<10x1x8xbf16>
    tpu.vector_store %arg12[%c0_3, %c17, %c0_4], %3 {strides = array<i32>} : memref<10x18x8xbf16, #tpu.memory_space<vmem>>, vector<10x1x8xbf16>,
    %c0_i32 = arith.constant 0 : i32
    %6 = arith.cmpi eq, %arg1, %c0_i32 : i32
    %7 = arith.extui %6 : i1 to i32
    %c0_i32_5 = arith.constant 0 : i32
    %8 = arith.cmpi ne, %7, %c0_i32_5 : i32
    scf.if %8 {
      %c0_62 = arith.constant 0 : index
      %c0_63 = arith.constant 0 : index
      %c0_64 = arith.constant 0 : index
      %97 = vector.load %arg12[%c0_62, %c0_63, %c0_64] : memref<10x18x8xbf16, #tpu.memory_space<vmem>>, vector<1x18x8xbf16>
      tpu.vector_store %arg12[%c0_62, %c0_63, %c0_64], %2 {strides = array<i32>} : memref<10x18x8xbf16, #tpu.memory_space<vmem>>, vector<1x18x8xbf16>,
      %c0_65 = arith.constant 0 : index
      %c0_66 = arith.constant 0 : index
      %c0_67 = arith.constant 0 : index
      %c0_68 = arith.constant 0 : index
      %98 = vector.load %arg2[%c0_65, %c0_66, %c0_67, %c0_68] : memref<1x16x16x16xbf16, #tpu.memory_space<vmem>>, vector<1x9x16x16xbf16>
      %99 = vector.shape_cast %98 : vector<1x9x16x16xbf16> to vector<9x16x16xbf16>
      %100 = vector.shape_cast %99 : vector<9x16x16xbf16> to vector<144x16xbf16>
      %c0_69 = arith.constant 0 : index
      %c0_70 = arith.constant 0 : index
      %101 = vector.load %arg3[%c0_69, %c0_70] : memref<16x8xbf16, #tpu.memory_space<vmem>>, vector<16x8xbf16>
      %cst_71 = arith.constant dense<0.000000e+00> : vector<144x8xf32>
      %102 = tpu.matmul %100, %101, %cst_71 {dimension_numbers = #tpu.dot_dimension_numbers<[1], [0], [0], [1], [0, 0, 1, 1], [], []>} : vector<144x16xbf16>, vector<16x8xbf16>, vector<144x8xf32> -> vector<144x8xf32>
      %c0_72 = arith.constant 0 : index
      %c0_73 = arith.constant 0 : index
      %103 = vector.load %arg6[%c0_72, %c0_73] : memref<1x8xf32, #tpu.memory_space<vmem>>, vector<1x8xf32>
      %104 = vector.broadcast %103 : vector<1x8xf32> to vector<144x8xf32>
      %105 = arith.addf %102, %104 : vector<144x8xf32>
      %cst_74 = arith.constant 0.000000e+00 : f32
      %106 = vector.broadcast %cst_74 : f32 to vector<144x8xf32>
      %107 = arith.maximumf %105, %106 : vector<144x8xf32>
      %108 = vector.shape_cast %107 : vector<144x8xf32> to vector<9x16x8xf32>
      %109 = arith.truncf %108 : vector<9x16x8xf32> to vector<9x16x8xbf16>
      %c1_75 = arith.constant 1 : index
      %c1_76 = arith.constant 1 : index
      %c0_77 = arith.constant 0 : index
      %110 = vector.load %arg12[%c1_75, %c1_76, %c0_77] : memref<10x18x8xbf16, #tpu.memory_space<vmem>>, vector<9x16x8xbf16>
      tpu.vector_store %arg12[%c1_75, %c1_76, %c0_77], %109 {strides = array<i32>} : memref<10x18x8xbf16, #tpu.memory_space<vmem>>, vector<9x16x8xbf16>,
    } else {
    }
    %c1_i32_6 = arith.constant 1 : i32
    %9 = arith.cmpi eq, %arg1, %c1_i32_6 : i32
    %10 = arith.extui %9 : i1 to i32
    %c0_i32_7 = arith.constant 0 : i32
    %11 = arith.cmpi ne, %10, %c0_i32_7 : i32
    scf.if %11 {
      %cst_62 = arith.constant 0.000000e+00 : bf16
      %97 = vector.broadcast %cst_62 : bf16 to vector<1x18x8xbf16>
      %c9 = arith.constant 9 : index
      %c0_63 = arith.constant 0 : index
      %c0_64 = arith.constant 0 : index
      %98 = vector.load %arg12[%c9, %c0_63, %c0_64] : memref<10x18x8xbf16, #tpu.memory_space<vmem>>, vector<1x18x8xbf16>
      tpu.vector_store %arg12[%c9, %c0_63, %c0_64], %97 {strides = array<i32>} : memref<10x18x8xbf16, #tpu.memory_space<vmem>>, vector<1x18x8xbf16>,
      %c1_i32_65 = arith.constant 1 : i32
      %99 = arith.subi %1, %c1_i32_65 : i32
      %c1_i32_66 = arith.constant 1 : i32
      %100 = arith.muli %c1_i32_66, %99 : i32
      %c0_67 = arith.constant 0 : index
      %101 = arith.index_cast %100 : i32 to index
      %c0_68 = arith.constant 0 : index
      %c0_69 = arith.constant 0 : index
      %102 = vector.load %arg2[%c0_67, %101, %c0_68, %c0_69] : memref<1x16x16x16xbf16, #tpu.memory_space<vmem>>, vector<1x9x16x16xbf16>
      %103 = vector.shape_cast %102 : vector<1x9x16x16xbf16> to vector<9x16x16xbf16>
      %104 = vector.shape_cast %103 : vector<9x16x16xbf16> to vector<144x16xbf16>
      %c0_70 = arith.constant 0 : index
      %c0_71 = arith.constant 0 : index
      %105 = vector.load %arg3[%c0_70, %c0_71] : memref<16x8xbf16, #tpu.memory_space<vmem>>, vector<16x8xbf16>
      %cst_72 = arith.constant dense<0.000000e+00> : vector<144x8xf32>
      %106 = tpu.matmul %104, %105, %cst_72 {dimension_numbers = #tpu.dot_dimension_numbers<[1], [0], [0], [1], [0, 0, 1, 1], [], []>} : vector<144x16xbf16>, vector<16x8xbf16>, vector<144x8xf32> -> vector<144x8xf32>
      %c0_73 = arith.constant 0 : index
      %c0_74 = arith.constant 0 : index
      %107 = vector.load %arg6[%c0_73, %c0_74] : memref<1x8xf32, #tpu.memory_space<vmem>>, vector<1x8xf32>
      %108 = vector.broadcast %107 : vector<1x8xf32> to vector<144x8xf32>
      %109 = arith.addf %106, %108 : vector<144x8xf32>
      %cst_75 = arith.constant 0.000000e+00 : f32
      %110 = vector.broadcast %cst_75 : f32 to vector<144x8xf32>
      %111 = arith.maximumf %109, %110 : vector<144x8xf32>
      %112 = vector.shape_cast %111 : vector<144x8xf32> to vector<9x16x8xf32>
      %113 = arith.truncf %112 : vector<9x16x8xf32> to vector<9x16x8xbf16>
      %c0_76 = arith.constant 0 : index
      %c1_77 = arith.constant 1 : index
      %c0_78 = arith.constant 0 : index
      %114 = vector.load %arg12[%c0_76, %c1_77, %c0_78] : memref<10x18x8xbf16, #tpu.memory_space<vmem>>, vector<9x16x8xbf16>
      tpu.vector_store %arg12[%c0_76, %c1_77, %c0_78], %113 {strides = array<i32>} : memref<10x18x8xbf16, #tpu.memory_space<vmem>>, vector<9x16x8xbf16>,
    } else {
    }
    %c0_8 = arith.constant 0 : index
    %c0_9 = arith.constant 0 : index
    %c0_10 = arith.constant 0 : index
    %12 = vector.load %arg12[%c0_8, %c0_9, %c0_10] : memref<10x18x8xbf16, #tpu.memory_space<vmem>>, vector<10x18x8xbf16>
    %cst_11 = arith.constant 0.000000e+00 : f32
    %13 = vector.broadcast %cst_11 : f32 to vector<128x8xf32>
    %14 = vector.extract_strided_slice %12 {offsets = [0, 0, 0], sizes = [8, 16, 8], strides = [1, 1, 1]} : vector<10x18x8xbf16> to vector<8x16x8xbf16>
    %15 = vector.shape_cast %14 : vector<8x16x8xbf16> to vector<128x8xbf16>
    %c0_12 = arith.constant 0 : index
    %c0_13 = arith.constant 0 : index
    %c0_14 = arith.constant 0 : index
    %16 = vector.load %arg4[%c0_12, %c0_13, %c0_14] : memref<9x8x8xbf16, #tpu.memory_space<vmem>>, vector<1x8x8xbf16>
    %17 = vector.shape_cast %16 : vector<1x8x8xbf16> to vector<8x8xbf16>
    %cst_15 = arith.constant dense<0.000000e+00> : vector<128x8xf32>
    %18 = tpu.matmul %15, %17, %cst_15 {dimension_numbers = #tpu.dot_dimension_numbers<[1], [0], [0], [1], [0, 0, 1, 1], [], []>} : vector<128x8xbf16>, vector<8x8xbf16>, vector<128x8xf32> -> vector<128x8xf32>
    %19 = arith.addf %13, %18 : vector<128x8xf32>
    %20 = vector.extract_strided_slice %12 {offsets = [0, 1, 0], sizes = [8, 16, 8], strides = [1, 1, 1]} : vector<10x18x8xbf16> to vector<8x16x8xbf16>
    %21 = vector.shape_cast %20 : vector<8x16x8xbf16> to vector<128x8xbf16>
    %c1 = arith.constant 1 : index
    %c0_16 = arith.constant 0 : index
    %c0_17 = arith.constant 0 : index
    %22 = vector.load %arg4[%c1, %c0_16, %c0_17] : memref<9x8x8xbf16, #tpu.memory_space<vmem>>, vector<1x8x8xbf16>
    %23 = vector.shape_cast %22 : vector<1x8x8xbf16> to vector<8x8xbf16>
    %cst_18 = arith.constant dense<0.000000e+00> : vector<128x8xf32>
    %24 = tpu.matmul %21, %23, %cst_18 {dimension_numbers = #tpu.dot_dimension_numbers<[1], [0], [0], [1], [0, 0, 1, 1], [], []>} : vector<128x8xbf16>, vector<8x8xbf16>, vector<128x8xf32> -> vector<128x8xf32>
    %25 = arith.addf %19, %24 : vector<128x8xf32>
    %26 = vector.extract_strided_slice %12 {offsets = [0, 2, 0], sizes = [8, 16, 8], strides = [1, 1, 1]} : vector<10x18x8xbf16> to vector<8x16x8xbf16>
    %27 = vector.shape_cast %26 : vector<8x16x8xbf16> to vector<128x8xbf16>
    %c2 = arith.constant 2 : index
    %c0_19 = arith.constant 0 : index
    %c0_20 = arith.constant 0 : index
    %28 = vector.load %arg4[%c2, %c0_19, %c0_20] : memref<9x8x8xbf16, #tpu.memory_space<vmem>>, vector<1x8x8xbf16>
    %29 = vector.shape_cast %28 : vector<1x8x8xbf16> to vector<8x8xbf16>
    %cst_21 = arith.constant dense<0.000000e+00> : vector<128x8xf32>
    %30 = tpu.matmul %27, %29, %cst_21 {dimension_numbers = #tpu.dot_dimension_numbers<[1], [0], [0], [1], [0, 0, 1, 1], [], []>} : vector<128x8xbf16>, vector<8x8xbf16>, vector<128x8xf32> -> vector<128x8xf32>
    %31 = arith.addf %25, %30 : vector<128x8xf32>
    %32 = vector.extract_strided_slice %12 {offsets = [1, 0, 0], sizes = [8, 16, 8], strides = [1, 1, 1]} : vector<10x18x8xbf16> to vector<8x16x8xbf16>
    %33 = vector.shape_cast %32 : vector<8x16x8xbf16> to vector<128x8xbf16>
    %c3 = arith.constant 3 : index
    %c0_22 = arith.constant 0 : index
    %c0_23 = arith.constant 0 : index
    %34 = vector.load %arg4[%c3, %c0_22, %c0_23] : memref<9x8x8xbf16, #tpu.memory_space<vmem>>, vector<1x8x8xbf16>
    %35 = vector.shape_cast %34 : vector<1x8x8xbf16> to vector<8x8xbf16>
    %cst_24 = arith.constant dense<0.000000e+00> : vector<128x8xf32>
    %36 = tpu.matmul %33, %35, %cst_24 {dimension_numbers = #tpu.dot_dimension_numbers<[1], [0], [0], [1], [0, 0, 1, 1], [], []>} : vector<128x8xbf16>, vector<8x8xbf16>, vector<128x8xf32> -> vector<128x8xf32>
    %37 = arith.addf %31, %36 : vector<128x8xf32>
    %38 = vector.extract_strided_slice %12 {offsets = [1, 1, 0], sizes = [8, 16, 8], strides = [1, 1, 1]} : vector<10x18x8xbf16> to vector<8x16x8xbf16>
    %39 = vector.shape_cast %38 : vector<8x16x8xbf16> to vector<128x8xbf16>
    %c4 = arith.constant 4 : index
    %c0_25 = arith.constant 0 : index
    %c0_26 = arith.constant 0 : index
    %40 = vector.load %arg4[%c4, %c0_25, %c0_26] : memref<9x8x8xbf16, #tpu.memory_space<vmem>>, vector<1x8x8xbf16>
    %41 = vector.shape_cast %40 : vector<1x8x8xbf16> to vector<8x8xbf16>
    %cst_27 = arith.constant dense<0.000000e+00> : vector<128x8xf32>
    %42 = tpu.matmul %39, %41, %cst_27 {dimension_numbers = #tpu.dot_dimension_numbers<[1], [0], [0], [1], [0, 0, 1, 1], [], []>} : vector<128x8xbf16>, vector<8x8xbf16>, vector<128x8xf32> -> vector<128x8xf32>
    %43 = arith.addf %37, %42 : vector<128x8xf32>
    %44 = vector.extract_strided_slice %12 {offsets = [1, 2, 0], sizes = [8, 16, 8], strides = [1, 1, 1]} : vector<10x18x8xbf16> to vector<8x16x8xbf16>
    %45 = vector.shape_cast %44 : vector<8x16x8xbf16> to vector<128x8xbf16>
    %c5 = arith.constant 5 : index
    %c0_28 = arith.constant 0 : index
    %c0_29 = arith.constant 0 : index
    %46 = vector.load %arg4[%c5, %c0_28, %c0_29] : memref<9x8x8xbf16, #tpu.memory_space<vmem>>, vector<1x8x8xbf16>
    %47 = vector.shape_cast %46 : vector<1x8x8xbf16> to vector<8x8xbf16>
    %cst_30 = arith.constant dense<0.000000e+00> : vector<128x8xf32>
    %48 = tpu.matmul %45, %47, %cst_30 {dimension_numbers = #tpu.dot_dimension_numbers<[1], [0], [0], [1], [0, 0, 1, 1], [], []>} : vector<128x8xbf16>, vector<8x8xbf16>, vector<128x8xf32> -> vector<128x8xf32>
    %49 = arith.addf %43, %48 : vector<128x8xf32>
    %50 = vector.extract_strided_slice %12 {offsets = [2, 0, 0], sizes = [8, 16, 8], strides = [1, 1, 1]} : vector<10x18x8xbf16> to vector<8x16x8xbf16>
    %51 = vector.shape_cast %50 : vector<8x16x8xbf16> to vector<128x8xbf16>
    %c6 = arith.constant 6 : index
    %c0_31 = arith.constant 0 : index
    %c0_32 = arith.constant 0 : index
    %52 = vector.load %arg4[%c6, %c0_31, %c0_32] : memref<9x8x8xbf16, #tpu.memory_space<vmem>>, vector<1x8x8xbf16>
    %53 = vector.shape_cast %52 : vector<1x8x8xbf16> to vector<8x8xbf16>
    %cst_33 = arith.constant dense<0.000000e+00> : vector<128x8xf32>
    %54 = tpu.matmul %51, %53, %cst_33 {dimension_numbers = #tpu.dot_dimension_numbers<[1], [0], [0], [1], [0, 0, 1, 1], [], []>} : vector<128x8xbf16>, vector<8x8xbf16>, vector<128x8xf32> -> vector<128x8xf32>
    %55 = arith.addf %49, %54 : vector<128x8xf32>
    %56 = vector.extract_strided_slice %12 {offsets = [2, 1, 0], sizes = [8, 16, 8], strides = [1, 1, 1]} : vector<10x18x8xbf16> to vector<8x16x8xbf16>
    %57 = vector.shape_cast %56 : vector<8x16x8xbf16> to vector<128x8xbf16>
    %c7 = arith.constant 7 : index
    %c0_34 = arith.constant 0 : index
    %c0_35 = arith.constant 0 : index
    %58 = vector.load %arg4[%c7, %c0_34, %c0_35] : memref<9x8x8xbf16, #tpu.memory_space<vmem>>, vector<1x8x8xbf16>
    %59 = vector.shape_cast %58 : vector<1x8x8xbf16> to vector<8x8xbf16>
    %cst_36 = arith.constant dense<0.000000e+00> : vector<128x8xf32>
    %60 = tpu.matmul %57, %59, %cst_36 {dimension_numbers = #tpu.dot_dimension_numbers<[1], [0], [0], [1], [0, 0, 1, 1], [], []>} : vector<128x8xbf16>, vector<8x8xbf16>, vector<128x8xf32> -> vector<128x8xf32>
    %61 = arith.addf %55, %60 : vector<128x8xf32>
    %62 = vector.extract_strided_slice %12 {offsets = [2, 2, 0], sizes = [8, 16, 8], strides = [1, 1, 1]} : vector<10x18x8xbf16> to vector<8x16x8xbf16>
    %63 = vector.shape_cast %62 : vector<8x16x8xbf16> to vector<128x8xbf16>
    %c8 = arith.constant 8 : index
    %c0_37 = arith.constant 0 : index
    %c0_38 = arith.constant 0 : index
    %64 = vector.load %arg4[%c8, %c0_37, %c0_38] : memref<9x8x8xbf16, #tpu.memory_space<vmem>>, vector<1x8x8xbf16>
    %65 = vector.shape_cast %64 : vector<1x8x8xbf16> to vector<8x8xbf16>
    %cst_39 = arith.constant dense<0.000000e+00> : vector<128x8xf32>
    %66 = tpu.matmul %63, %65, %cst_39 {dimension_numbers = #tpu.dot_dimension_numbers<[1], [0], [0], [1], [0, 0, 1, 1], [], []>} : vector<128x8xbf16>, vector<8x8xbf16>, vector<128x8xf32> -> vector<128x8xf32>
    %67 = arith.addf %61, %66 : vector<128x8xf32>
    %c0_40 = arith.constant 0 : index
    %c0_41 = arith.constant 0 : index
    %68 = vector.load %arg7[%c0_40, %c0_41] : memref<1x8xf32, #tpu.memory_space<vmem>>, vector<1x8xf32>
    %69 = vector.broadcast %68 : vector<1x8xf32> to vector<128x8xf32>
    %70 = arith.addf %67, %69 : vector<128x8xf32>
    %cst_42 = arith.constant 0.000000e+00 : f32
    %71 = vector.broadcast %cst_42 : f32 to vector<128x8xf32>
    %72 = arith.maximumf %70, %71 : vector<128x8xf32>
    %73 = arith.truncf %72 : vector<128x8xf32> to vector<128x8xbf16>
    %c0_43 = arith.constant 0 : index
    %c0_44 = arith.constant 0 : index
    %74 = vector.load %arg5[%c0_43, %c0_44] : memref<8x32xbf16, #tpu.memory_space<vmem>>, vector<8x32xbf16>
    %cst_45 = arith.constant dense<0.000000e+00> : vector<128x32xf32>
    %75 = tpu.matmul %73, %74, %cst_45 {dimension_numbers = #tpu.dot_dimension_numbers<[1], [0], [0], [1], [0, 0, 1, 1], [], []>} : vector<128x8xbf16>, vector<8x32xbf16>, vector<128x32xf32> -> vector<128x32xf32>
    %c0_46 = arith.constant 0 : index
    %c0_47 = arith.constant 0 : index
    %76 = vector.load %arg8[%c0_46, %c0_47] : memref<1x32xf32, #tpu.memory_space<vmem>>, vector<1x32xf32>
    %77 = vector.broadcast %76 : vector<1x32xf32> to vector<128x32xf32>
    %78 = arith.addf %75, %77 : vector<128x32xf32>
    %c1_i32_48 = arith.constant 1 : i32
    %79 = arith.muli %c1_i32_48, %arg1 : i32
    %c8_i32_49 = arith.constant 8 : i32
    %80 = arith.muli %79, %c8_i32_49 : i32
    %c0_50 = arith.constant 0 : index
    %81 = arith.index_cast %80 : i32 to index
    %c0_51 = arith.constant 0 : index
    %c0_52 = arith.constant 0 : index
    %82 = vector.load %arg2[%c0_50, %81, %c0_51, %c0_52] : memref<1x16x16x16xbf16, #tpu.memory_space<vmem>>, vector<1x8x16x16xbf16>
    %83 = vector.shape_cast %82 : vector<1x8x16x16xbf16> to vector<8x16x16xbf16>
    %84 = vector.shape_cast %83 : vector<8x16x16xbf16> to vector<128x16xbf16>
    %c0_53 = arith.constant 0 : index
    %c0_54 = arith.constant 0 : index
    %85 = vector.load %arg9[%c0_53, %c0_54] : memref<16x32xbf16, #tpu.memory_space<vmem>>, vector<16x32xbf16>
    %cst_55 = arith.constant dense<0.000000e+00> : vector<128x32xf32>
    %86 = tpu.matmul %84, %85, %cst_55 {dimension_numbers = #tpu.dot_dimension_numbers<[1], [0], [0], [1], [0, 0, 1, 1], [], []>} : vector<128x16xbf16>, vector<16x32xbf16>, vector<128x32xf32> -> vector<128x32xf32>
    %c0_56 = arith.constant 0 : index
    %c0_57 = arith.constant 0 : index
    %87 = vector.load %arg10[%c0_56, %c0_57] : memref<1x32xf32, #tpu.memory_space<vmem>>, vector<1x32xf32>
    %88 = vector.broadcast %87 : vector<1x32xf32> to vector<128x32xf32>
    %89 = arith.addf %86, %88 : vector<128x32xf32>
    %90 = arith.addf %78, %89 : vector<128x32xf32>
    %cst_58 = arith.constant 0.000000e+00 : f32
    %91 = vector.broadcast %cst_58 : f32 to vector<128x32xf32>
    %92 = arith.maximumf %90, %91 : vector<128x32xf32>
    %93 = arith.truncf %92 : vector<128x32xf32> to vector<128x32xbf16>
    %c0_59 = arith.constant 0 : index
    %c0_60 = arith.constant 0 : index
    %c0_61 = arith.constant 0 : index
    %94 = vector.load %arg11[%c0_59, %c0_60, %c0_61] : memref<1x128x32xbf16, #tpu.memory_space<vmem>>, vector<1x128x32xbf16>
    %95 = vector.shape_cast %94 : vector<1x128x32xbf16> to vector<128x32xbf16>
    %96 = vector.shape_cast %93 : vector<128x32xbf16> to vector<1x128x32xbf16>
    tpu.vector_store %arg11[%c0_59, %c0_60, %c0_61], %96 {strides = array<i32>} : memref<1x128x32xbf16, #tpu.memory_space<vmem>>, vector<1x128x32xbf16>,
    return
  }
  func.func @transform_0(%arg0: i32, %arg1: i32) -> (i32, i32, i32, i32) {
    %c0_i32 = arith.constant 0 : i32
    %c0_i32_0 = arith.constant 0 : i32
    %c0_i32_1 = arith.constant 0 : i32
    %c0_i32_2 = arith.constant 0 : i32
    return %arg0, %c0_i32, %c0_i32_0, %c0_i32_1 : i32, i32, i32, i32
  }
  func.func @transform_1(%arg0: i32, %arg1: i32) -> (i32, i32) {
    %c0_i32 = arith.constant 0 : i32
    %c0_i32_0 = arith.constant 0 : i32
    %c0_i32_1 = arith.constant 0 : i32
    return %c0_i32, %c0_i32_0 : i32, i32
  }
  func.func @transform_2(%arg0: i32, %arg1: i32) -> (i32, i32, i32) {
    %c0_i32 = arith.constant 0 : i32
    %c0_i32_0 = arith.constant 0 : i32
    %c0_i32_1 = arith.constant 0 : i32
    %c0_i32_2 = arith.constant 0 : i32
    return %c0_i32, %c0_i32_0, %c0_i32_1 : i32, i32, i32
  }
  func.func @transform_3(%arg0: i32, %arg1: i32) -> (i32, i32) {
    %c0_i32 = arith.constant 0 : i32
    %c0_i32_0 = arith.constant 0 : i32
    %c0_i32_1 = arith.constant 0 : i32
    return %c0_i32, %c0_i32_0 : i32, i32
  }
  func.func @transform_4(%arg0: i32, %arg1: i32) -> (i32, i32) {
    %c0_i32 = arith.constant 0 : i32
    %c0_i32_0 = arith.constant 0 : i32
    %c0_i32_1 = arith.constant 0 : i32
    return %c0_i32, %c0_i32_0 : i32, i32
  }
  func.func @transform_5(%arg0: i32, %arg1: i32) -> (i32, i32) {
    %c0_i32 = arith.constant 0 : i32
    %c0_i32_0 = arith.constant 0 : i32
    %c0_i32_1 = arith.constant 0 : i32
    return %c0_i32, %c0_i32_0 : i32, i32
  }
  func.func @transform_6(%arg0: i32, %arg1: i32) -> (i32, i32) {
    %c0_i32 = arith.constant 0 : i32
    %c0_i32_0 = arith.constant 0 : i32
    %c0_i32_1 = arith.constant 0 : i32
    return %c0_i32, %c0_i32_0 : i32, i32
  }
  func.func @transform_7(%arg0: i32, %arg1: i32) -> (i32, i32) {
    %c0_i32 = arith.constant 0 : i32
    %c0_i32_0 = arith.constant 0 : i32
    %c0_i32_1 = arith.constant 0 : i32
    return %c0_i32, %c0_i32_0 : i32, i32
  }
  func.func @transform_8(%arg0: i32, %arg1: i32) -> (i32, i32) {
    %c0_i32 = arith.constant 0 : i32
    %c0_i32_0 = arith.constant 0 : i32
    %c0_i32_1 = arith.constant 0 : i32
    return %c0_i32, %c0_i32_0 : i32, i32
  }
  func.func @transform_9(%arg0: i32, %arg1: i32) -> (i32, i32, i32) {
    %c0_i32 = arith.constant 0 : i32
    %c0_i32_0 = arith.constant 0 : i32
    return %arg0, %arg1, %c0_i32 : i32, i32, i32
  }
}

</mosaic_0001>

<bundles_post_ra>
// kernel: tpu_custom_call.1
= control target key start
LH: loop header
LB: loop body
LE: loop exit
PB: predicated region body
PF: predicated region fallthrough
CT: control target
= control target key end

     0   :  { %14 = vsyncpa [#allocation4], 0  ;;  %s5939_s0 = inlined_call_operand.hbm [shape: bf16[2,16,16,16], index: 0, kind: input, shape index: {}]   ;;  %s5940_s1 = inlined_call_operand.vmem [shape: bf16[16,8], index: 1, kind: input, shape index: {}]   ;;  %s5941_s2 = inlined_call_operand.vmem [shape: bf16[9,8,8], index: 2, kind: input, shape index: {}]   ;;  %s5942_s3 = inlined_call_operand.vmem [shape: bf16[8,32], index: 3, kind: input, shape index: {}]   ;;  %s5943_s4 = inlined_call_operand.vmem [shape: f32[1,8], index: 4, kind: input, shape index: {}]   ;;  %s5944_s5 = inlined_call_operand.vmem [shape: f32[1,8], index: 5, kind: input, shape index: {}]   ;;  %s5945_s6 = inlined_call_operand.vmem [shape: f32[1,32], index: 6, kind: input, shape index: {}]   ;;  %s5946_s7 = inlined_call_operand.vmem [shape: bf16[16,32], index: 7, kind: input, shape index: {}]   ;;  %s5947_s8 = inlined_call_operand.vmem [shape: f32[1,32], index: 8, kind: input, shape index: {}]   ;;  %s5948_s9 = inlined_call_operand.vmem [shape: bf16[2,256,32], index: 9, kind: output, shape index: {}]  }
   0x1   :  { %16 = vsyncpa [#allocation4 + $0x1], 0  ;;  %s4880_s30 = smov 0   ;;  %s4882_s10 = smov 0  }
   0x2   :  { %s4884_s11 = smov 0   ;;  %s4886_s12 = smov 0  }
   0x3   :  { %s4888_s13 = smov 0   ;;  %s4890_s14 = smov 0  }
   0x4   :  { %s4892_s15 = smov 0   ;;  %s4894_s16 = smov 0  }
   0x5 LB: > { %s3701_s17 = sadd.s32 4294967295, %s4819_s16   ;;  %s31_s18 = sadd.s32 1, %s4811_s14  ;;  %s4819_s16 = sphi %s4894_s16, %s22_s16   ;;  %s4815_s15 = sphi %s4892_s15, %s5979_s15   ;;  %s4811_s14 = sphi %s4890_s14, %s5978_s14   ;;  %s4807_s13 = sphi %s4888_s13, %s5977_s13   ;;  %s4803_s12 = sphi %s4886_s12, %s5976_s12   ;;  %s4799_s11 = sphi %s4884_s11, %s5975_s11   ;;  %s4795_s10 = sphi %s4882_s10, %s5974_s10   ;;  %s4791_s30 = sphi %s4880_s30, %s5973_s30  }
   0x6   : > { %p32_p0 = scmp.ge.s32.totalorder %s31_s18, 2  ;;  %s34_s19 = sadd.s32 1, %s4815_s15 }
   0x7   : > { %s41_s20 = sadd.s32 1, %s4799_s11  ;;  %p48_p1 = scmp.ne.s32.totalorder %s4799_s11, %s4795_s10 }
   0x8   : > { %s5981_s18 = smov (%p32_p0, %s31_s18), 0  ;;  %s5983_s19 = smov (!%p32_p0, %s34_s19), %s4815_s15 }
   0x9   : > { %5950 = sst [smem:[#allocation6_spill]] %s5981_s18  ;;  %p49_p2 = scmp.eq.s32.totalorder %s4819_s16, 0 }
   0xa   : > { %p54_p3 = scmp.ne.s32.totalorder %s4795_s10, %s4791_s30  ;;  %p36_p4 = scmp.ge.s32.totalorder %s5983_s19, 2 }
   0xb   : > { %p55_p5 = scmp.eq.s32.totalorder %s3701_s17, 0  ;;  %p4929_p6 = por %p49_p2, %p48_p1 }
   0xc   : > { %s5985_s19 = smov (%p36_p4, %s5983_s19), 0  ;;  %p4611_p8 = scmp.lt.s32.totalorder %s4819_s16, 4 }
   0xd   : > { %5952 = sst [smem:[#allocation7_spill]] %s5985_s19  ;;  %p4935_p7 = por %p55_p5, %p54_p3 }
   0xe   : > { %s38_s23 = ssub.s32 %s4815_s15, %s5985_s19  ;;  %s298_s24 = sand.u32 1, %s4799_s11  }
   0xf   : > { %p39_p9 = scmp.eq.s32.totalorder %s38_s23, 0  ;;  %s3705_s25 = sshll.u32 %s298_s24, 7 }
  0x10   : > { %s3963_s26 = sshll.u32 %s4815_s15, 11  ;;  %s302_s17 = scalar_lea.vmem [#allocation3], %s3705_s25 }
  0x11   : > { %s4945_s27 = scalar_select %p39_p9, %s4799_s11, %s41_s20  }
  0x12   : > { %s4950_s30 = scalar_lea.hbm %s5939_s0, %s3963_s26  ;;  %s309_s18 = sshll.u32 %s302_s17, 4  ;;  %s4958_s18 = int_to_ptr.vmem [resolvable:$true] %s309_s18 }
  0x13   : > { %p4954_p10 = pnand %p4611_p8, %p4929_p6  ;;  %s4960_s20 = scalar_lea.sflag [#allocation4], %s298_s24 }
  0x14   : > { %s4723_s23 = scalar_lea.hbm %s4950_s30, 2048  ;;  %s4728_s26 = scalar_lea.hbm %s5939_s0, 4096 }
  0x15   : > { %p4724_p11 = scmp.ne.s32.totalorder %s4950_s30, %s4723_s23  ;;  %p4725_p12 = pneg %p4954_p10 }
  0x16   : > { %p4729_p1 = scmp.lt.u32.totalorder %s4950_s30, %s5939_s0  ;;  %p4730_p2 = scmp.lt.u32.totalorder %s4728_s26, %s4723_s23 }
  0x17   : > { %p4726_p13 = pnand %p4725_p12, %p4724_p11  ;;  %p4732_p4 = scmp.lt.u32.totalorder %s4723_s23, %s4950_s30 }
  0x18   : > { %p4731_p3 = por %p4730_p2, %p4729_p1 }
  0x19   : > { %p4727_p0 = pneg %p4726_p13 }
  0x1a   : > { %p4733_p5 = por %p4732_p4, %p4731_p3 }
  0x1c   : > { %p4734_p6 = pnand %p4733_p5, %p4727_p0 }
  0x1e   : > { %4737 = shalt.err (!%p4734_p6)
}
  0x1f   : > { %s4738_s24 = scalar_lea.vmem %s4958_s18, 2048  ;;  %s4821_s17 = smov [#allocation3]  }
  0x20   : > { %p4739_p8 = scmp.ne.s32.totalorder %s4958_s18, %s4738_s24  ;;  %s4743_s25 = sshll.u32 %s4821_s17, 4  ;;  %s4744_s25 = int_to_ptr.vmem [resolvable:$false] %s4743_s25 }
  0x21   : > { %s4745_s21 = scalar_lea.vmem %s4744_s25, 4096  ;;  %p4746_p13 = scmp.lt.s32.totalorder %s4958_s18, %s4744_s25 }
  0x22   : > { %p4741_p9 = pnand %p4739_p8, %p4725_p12  ;;  %p4747_p1 = scmp.lt.s32.totalorder %s4745_s21, %s4738_s24 }
  0x24   : > { %p4742_p11 = pneg %p4741_p9  ;;  %p4748_p2 = por %p4747_p1, %p4746_p13 }
  0x26   : > { %p4749_p3 = pnand %p4748_p2, %p4742_p11 }
  0x28   : > { %4752 = shalt.err (!%p4749_p3)
}
  0x29   : > { %s4822_s23 = smov 64   ;;  %s4823_s26 = smov 4  }
  0x2a   : > { %4610 = dma.hbm_to_vmem [thread:$0]  (!%p4954_p10), %s4950_s30, 2048, %s4958_s18, %s4960_s20, %s4822_s23, %s4822_s23, %s4823_s26  }
  0x2b   : > { %p3708_p12 = scmp.ge.s32.totalorder %s4819_s16, 1  ;;  %p317_p0 = scmp.lt.s32.totalorder %s4819_s16, 5 }
  0x2d   : > { %p318_p4 = pnand %p3708_p12, %p317_p0 }
  0x2e   : > { %s323_s28 = sand.u32 (!%p318_p4), 1, %s4795_s10  }
  0x2f   : > { %321 = sbr.rel (%p318_p4) target bundleno = 1270 (0x4f6), region = 56  ;;  %s3709_s29 = sshll.u32 (!%p318_p4), %s323_s28, 7 }
  0x30   : > { %s324_s24 = scalar_lea.sflag (!%p318_p4), [#allocation4], %s323_s28  ;;  %s4991_s17 = scalar_lea.vmem (!%p318_p4), [#allocation3], %s3709_s29 }
  0x36   : > { %4786 = dma.done.wait (%p4935_p7), %s324_s24, 2048  }
  0x37   : > { %4788 = vsyncadd (%p4935_p7), %s324_s24, 4294965248  ;;  %s3710_s18 = sshll.u32 %s4803_s12, 4  ;;  %p367_p10 = scmp.lt.s32.totalorder %s4807_s13, 1  ;;  %vm378_vm0 = vcmask 57344   ;;  %vm379_vm1 = vsmask.f32 256 }
  0x38   : > { %p369_p5 = scmp.lt.s32.totalorder %s3710_s18, 31  ;;  %s3713_s19 = sshll.u32 %s4803_s12, 3  ;;  %vm5003_vm2 = vmand %vm378_vm0, %vm379_vm1  ;;  %vm411_vm3 = vsmask.f32 7938  ;;  %v381_v1 = vld [vmem:[#allocation2] sm:$0x1] }
  0x39   : > { %s5987_s13 = smov (!%p367_p10, %s4807_s13), 1  ;;  %v384_v2 = vld [vmem:[#allocation2 + $0xc] sm:$0x1]  ;;  %v387_v3 = vld [vmem:[#allocation2 + $0x18] sm:$0x1]  ;;  %v382_v4 = vsel %vm5003_vm2, 0, %v381_v1  ;;  %vm5026_vm4 = vmand %vm378_vm0, %vm411_vm3 }
  0x3a   : > { %s5989_s18 = smov (!%p369_p5, %s3710_s18), 31  ;;  %s3711_s30 = sshll.u32 %s5987_s13, 5  ;;  %v385_v5 = vsel %vm5003_vm2, 0, %v384_v2  ;;  %v388_v6 = vsel %vm5003_vm2, 0, %v387_v3  ;;  %v390_v7 = vld [vmem:[#allocation2 + $0x24] sm:$0x1] }
  0x3b   : > { %s372_s20 = sadd.s32 %s3711_s30, %s5989_s18  ;;  %383 = vst [vmem:[#allocation2] sm:$0x1] %v382_v4  ;;  %386 = vst [vmem:[#allocation2 + $0xc] sm:$0x1] %v385_v5  ;;  %v391_v8 = vsel %vm5003_vm2, 0, %v390_v7  ;;  %p3714_p7 = scmp.ne.s32.totalorder %s4803_s12, 0 }
  0x3c   : > { %s3712_s22 = sshll.u32 %s372_s20, 2  ;;  %389 = vst [vmem:[#allocation2 + $0x18] sm:$0x1] %v388_v6  ;;  %v393_v9 = vld [vmem:[#allocation2 + $0x30] sm:$0x1]  ;;  %v4684_v42 = vld [vmem:[%s5940_s1] sm:$0xff] (!%p3714_p7)  }
  0x3d   : > { %s5010_s23 = scalar_lea.vmem %s5948_s9, %s3712_s22  ;;  %v396_v10 = vld [vmem:[#allocation2 + $0x3c] sm:$0x1]  ;;  %392 = vst [vmem:[#allocation2 + $0x24] sm:$0x1] %v391_v8  ;;  %v394_v11 = vsel %vm5003_vm2, 0, %v393_v9  ;;  %v4824_v43 = vmov (!%p3714_p7), 0.0  }
  0x3e   : > { %v397_v12 = vsel %vm5003_vm2, 0, %v396_v10  ;;  %v399_v13 = vld [vmem:[#allocation2 + $0x48] sm:$0x1]  ;;  %v402_v14 = vld [vmem:[#allocation2 + $0x54] sm:$0x1]  ;;  %4138 = vmatprep.subr.bf16.mxu0 (!%p3714_p7), %v4824_v43  ;;  %4412 = vmatprep.subr.bf16.mxu1 (!%p3714_p7), %v4824_v43  ;;  %v4685_v44 = vld [vmem:[%s4991_s17] sm:$0xff] (!%p3714_p7)  }
  0x3f   : > { %395 = vst [vmem:[#allocation2 + $0x30] sm:$0x1] %v394_v11  ;;  %398 = vst [vmem:[#allocation2 + $0x3c] sm:$0x1] %v397_v12  ;;  %v400_v16 = vsel %vm5003_vm2, 0, %v399_v13  ;;  %v403_v17 = vsel %vm5003_vm2, 0, %v402_v14  ;;  %4139 = vmatpush3.bf16.msra.mxu0 (!%p3714_p7), %v4684_v42  ;;  %4413 = vmatpush3.bf16.msra.mxu1 (!%p3714_p7), %v4684_v42 }
  0x40   : > { %v405_v18 = vld [vmem:[#allocation2 + $0x60] sm:$0x1]  ;;  %v408_v19 = vld [vmem:[#allocation2 + $0x6c] sm:$0x1]  ;;  %401 = vst [vmem:[#allocation2 + $0x48] sm:$0x1] %v400_v16 }
  0x41   : > { %404 = vst [vmem:[#allocation2 + $0x54] sm:$0x1] %v403_v17  ;;  %v406_v20 = vsel %vm5003_vm2, 0, %v405_v18  ;;  %v409_v21 = vsel %vm5003_vm2, 0, %v408_v19  ;;  %v413_v22 = vld [vmem:[#allocation2 + $0x8] sm:$0x1] }
  0x42   : > { %v416_v23 = vld [vmem:[#allocation2 + $0x14] sm:$0x1]  ;;  %407 = vst [vmem:[#allocation2 + $0x60] sm:$0x1] %v406_v20  ;;  %410 = vst [vmem:[#allocation2 + $0x6c] sm:$0x1] %v409_v21 }
  0x43   : > { %v414_v24 = vsel %vm5026_vm4, 0, %v413_v22  ;;  %v417_v25 = vsel %vm5026_vm4, 0, %v416_v23  ;;  %v419_v26 = vld [vmem:[#allocation2 + $0x20] sm:$0x1]  ;;  %v422_v27 = vld [vmem:[#allocation2 + $0x2c] sm:$0x1] }
  0x44   : > { %415 = vst [vmem:[#allocation2 + $0x8] sm:$0x1] %v414_v24  ;;  %418 = vst [vmem:[#allocation2 + $0x14] sm:$0x1] %v417_v25  ;;  %v420_v28 = vsel %vm5026_vm4, 0, %v419_v26  ;;  %v423_v29 = vsel %vm5026_vm4, 0, %v422_v27 }
  0x45   : > { %v425_v30 = vld [vmem:[#allocation2 + $0x38] sm:$0x1]  ;;  %v428_v31 = vld [vmem:[#allocation2 + $0x44] sm:$0x1]  ;;  %421 = vst [vmem:[#allocation2 + $0x20] sm:$0x1] %v420_v28 }
  0x46   : > { %424 = vst [vmem:[#allocation2 + $0x2c] sm:$0x1] %v423_v29  ;;  %v426_v32 = vsel %vm5026_vm4, 0, %v425_v30  ;;  %v429_v33 = vsel %vm5026_vm4, 0, %v428_v31  ;;  %v431_v34 = vld [vmem:[#allocation2 + $0x50] sm:$0x1] }
  0x47   : > { %v434_v35 = vld [vmem:[#allocation2 + $0x5c] sm:$0x1]  ;;  %427 = vst [vmem:[#allocation2 + $0x38] sm:$0x1] %v426_v32  ;;  %430 = vst [vmem:[#allocation2 + $0x44] sm:$0x1] %v429_v33 }
  0x48   : > { %v432_v36 = vsel %vm5026_vm4, 0, %v431_v34  ;;  %v435_v37 = vsel %vm5026_vm4, 0, %v434_v35  ;;  %v437_v38 = vld [vmem:[#allocation2 + $0x68] sm:$0x1]  ;;  %v440_v39 = vld [vmem:[#allocation2 + $0x74] sm:$0x1] }
  0x49   : > { %433 = vst [vmem:[#allocation2 + $0x50] sm:$0x1] %v432_v36  ;;  %436 = vst [vmem:[#allocation2 + $0x5c] sm:$0x1] %v435_v37  ;;  %v438_v40 = vsel %vm5026_vm4, 0, %v437_v38  ;;  %v441_v41 = vsel %vm5026_vm4, 0, %v440_v39 }
  0x4a   : > { %439 = vst [vmem:[#allocation2 + $0x68] sm:$0x1] %v438_v40  ;;  %442 = vst [vmem:[#allocation2 + $0x74] sm:$0x1] %v441_v41  ;;  %446 = sbr.rel (%p3714_p7) target bundleno = 342 (0x156), region = 64  ;;  %vm4825_vm5 = vmmov (!%p3714_p7), 0  }
  0x4b   : > { %4140 = vmatprep.mubr.msk.bf16.mxu0 (!%p3714_p7), %vm4825_vm5, %v4824_v43  ;;  %vm530_vm6 = vcmask (!%p3714_p7), 130048   ;;  %v4686_v45 = vld [vmem:[%s4991_s17 + $0x28] sm:$0xff] (!%p3714_p7)   ;;  %4160 = vmatprep.mubr.msk.bf16.mxu1 (!%p3714_p7), %vm4825_vm5, %v4824_v43  ;;  %vm447_vm7 = vcmask (!%p3714_p7), 60416   ;;  %v4826_v46 = vmov (!%p3714_p7), 0   ;;  %v4688_v48 = vld [vmem:[%s4991_s17 + $0x30] sm:$0xff] (!%p3714_p7)   ;;  %v4690_v50 = vld [vmem:[%s4991_s17 + $0x38] sm:$0xff] (!%p3714_p7)  }
  0x4c   : > { %4141 = vmatmul.mubr.msk.bf16.vlgmr.msra.gmra.mrb[0].mxu0 (!%p3714_p7), %vm530_vm6, %v4685_v44  ;;  %448 = vst.msk [vmem:[#allocation2] sm:$0xf] (!%p3714_p7), %vm447_vm7, %v4826_v46  ;;  %449 = vst.msk [vmem:[#allocation2 + $0x4] sm:$0xf] (!%p3714_p7), %vm447_vm7, %v4826_v46  ;;  %4161 = vmatmul.mubr.msk.bf16.vlgmr.msra.gmra.mrb[0].mxu1 (!%p3714_p7), %vm530_vm6, %v4686_v45  ;;  %v4687_v47 = vld [vmem:[%s4991_s17 + $0x8] sm:$0xff] (!%p3714_p7)   ;;  %v4689_v49 = vld [vmem:[%s4991_s17 + $0x10] sm:$0xff] (!%p3714_p7)  }
  0x4d   : > { %451 = vst.msk [vmem:[#allocation2 + $0x8] sm:$0x1] (!%p3714_p7), %vm378_vm0, %v4826_v46  ;;  %4144 = vmatprep.mubr.msk.bf16.mxu0 (!%p3714_p7), %vm4825_vm5, %v4824_v43  ;;  %4164 = vmatprep.mubr.msk.bf16.mxu1 (!%p3714_p7), %vm4825_vm5, %v4824_v43  ;;  %v4691_v51 = vld [vmem:[%s4991_s17 + $0x18] sm:$0xff] (!%p3714_p7)   ;;  %v4692_v52 = vld [vmem:[%s4991_s17 + $0x40] sm:$0xff] (!%p3714_p7)   ;;  %v5095_v54 = vld [vmem:[%s5943_s4] ss:$0 sm:$0xff] (!%p3714_p7) }
  0x4e   : > { %v4693_v53 = vld [vmem:[%s4991_s17 + $0x20] sm:$0xff] (!%p3714_p7)   ;;  %vm735_vm8 = vsmask.f32 (!%p3714_p7), 4368  ;;  %v920_v13 = vld [vmem:[#allocation2 + $0xc] sm:$0xf] (!%p3714_p7)  ;;  %vm5104_vm9 = vmand (!%p3714_p7), %vm447_vm7, %vm411_vm3 }
  0x4f   : > { %v955_v21 = vld [vmem:[#allocation2 + $0x48] sm:$0xf] (!%p3714_p7)  ;;  %vm5111_vm10 = vmor (!%p3714_p7), %vm379_vm1, %vm735_vm8  ;;  %v924_v39 = vld [vmem:[#allocation2 + $0x14] sm:$0x1] (!%p3714_p7) }
  0x54   : > { %4145 = vmatmul.mubr.msk.bf16.gmra.mrb[4].mxu0 %vm530_vm6, %v4687_v47  ;;  %4165 = vmatmul.mubr.msk.bf16.gmra.mrb[4].mxu1 %vm530_vm6, %v4688_v48  ;;  %v959_v48 = vld [vmem:[#allocation2 + $0x50] sm:$0x1] }
  0x55   : > { %4148 = vmatprep.mubr.msk.bf16.mxu0 %vm4825_vm5, %v4824_v43  ;;  %4168 = vmatprep.mubr.msk.bf16.mxu1 %vm4825_vm5, %v4824_v43 }
  0x5c   : > { %4149 = vmatmul.mubr.msk.bf16.gmra.mrb[8].mxu0 %vm530_vm6, %v4689_v49  ;;  %4169 = vmatmul.mubr.msk.bf16.gmra.mrb[8].mxu1 %vm530_vm6, %v4690_v50 }
  0x5d   : > { %4152 = vmatprep.mubr.msk.bf16.mxu0 %vm4825_vm5, %v4824_v43  ;;  %4172 = vmatprep.mubr.msk.bf16.mxu1 %vm4825_vm5, %v4824_v43 }
  0x64   : > { %4153 = vmatmul.mubr.msk.bf16.gmra.mrb[12].mxu0 %vm530_vm6, %v4691_v51  ;;  %4173 = vmatmul.mubr.msk.bf16.gmra.mrb[12].mxu1 %vm530_vm6, %v4692_v52 }
  0x65   : > { %4156 = vmatprep.mubr.msk.bf16.mxu0 %vm4825_vm5, %v4824_v43 }
  0x6c   : > { %4157 = vmatmul.mubr.msk.bf16.gmra.mrb[16].mxu0 %vm530_vm6, %v4693_v53 }
 0x11f   : > { %v592_v55 = vpop.f32.mrb[0].mxu0  ;;  %v632_v58 = vpop.f32.mrb[0].mxu1 }
 0x120   : > { %v593_v56 = vadd.f32 %v5095_v54, %v592_v55  ;;  %v4142_v57 = vpop.f32.mrb[1].mxu0  ;;  %v633_v60 = vadd.f32 %v5095_v54, %v632_v58  ;;  %v4162_v61 = vpop.f32.mrb[1].mxu1 }
 0x121   : > { %v595_v59 = vpop.f32.mrb[2].mxu0  ;;  %v635_v2 = vpop.f32.mrb[2].mxu1 }
 0x122   : > { %v663_v62 = vmax.f32 %v593_v56, 0.0  ;;  %v596_v63 = vadd.f32 %v5095_v54, %v595_v59  ;;  %v4143_v1 = vpop.f32.mrb[3].mxu0  ;;  %v673_v3 = vmax.f32 %v633_v60, 0.0  ;;  %v636_v4 = vadd.f32 %v5095_v54, %v635_v2  ;;  %v4163_v5 = vpop.f32.mrb[3].mxu1 }
 0x124   : > { %v3964_v6 = vpack.c.bf16 %v663_v62, %v663_v62  ;;  %v664_v7 = vmax.f32 %v596_v63, 0.0  ;;  %v3974_v8 = vpack.c.bf16 %v673_v3, %v673_v3  ;;  %v674_v9 = vmax.f32 %v636_v4, 0.0 }
 0x126   : > { %v738_v10 = vshrl.u32 %v3964_v6, 16  ;;  %v3965_v11 = vpack.c.bf16 %v664_v7, %v664_v7  ;;  %v741_v12 = vshll.u32 %v3964_v6, 16  ;;  %v823_v14 = vshrl.u32 %v3974_v8, 16  ;;  %v927_v6 = vld [vmem:[#allocation2 + $0x18] sm:$0xf] }
 0x127   : > { %v826_v15 = vshll.u32 %v3974_v8, 16  ;;  %v3975_v16 = vpack.c.bf16 %v674_v9, %v674_v9  ;;  %v600_v17 = vpop.f32.mrb[4].mxu0  ;;  %v640_v24 = vpop.f32.mrb[4].mxu1 }
 0x128   : > { %v740_v18 = vrot.slane %v738_v10, 7  ;;  %v746_v19 = vshrl.u32 %v3965_v11, 16  ;;  %v749_v20 = vshll.u32 %v3965_v11, 16  ;;  %v601_v22 = vadd.f32 %v5095_v54, %v600_v17  ;;  %v4146_v23 = vpop.f32.mrb[5].mxu0  ;;  %v4166_v31 = vpop.f32.mrb[5].mxu1 }
 0x129   : > { %v825_v26 = vrot.slane %v823_v14, 7  ;;  %v831_v27 = vshrl.u32 %v3975_v16, 16  ;;  %v834_v28 = vshll.u32 %v3975_v16, 16  ;;  %v603_v29 = vpop.f32.mrb[6].mxu0  ;;  %v641_v30 = vadd.f32 %v5095_v54, %v640_v24  ;;  %v643_v37 = vpop.f32.mrb[6].mxu1 }
 0x12a   : > { %v743_v32 = vor.u32 %v741_v12, %v740_v18  ;;  %v744_v33 = vrot.slane %v740_v18, 4  ;;  %v748_v34 = vrot.slane %v746_v19, 7  ;;  %v665_v35 = vmax.f32 %v601_v22, 0.0  ;;  %v4147_v36 = vpop.f32.mrb[7].mxu0  ;;  %v4167_v44 = vpop.f32.mrb[7].mxu1 }
 0x12b   : > { %v828_v40 = vor.u32 %v826_v15, %v825_v26  ;;  %v829_v41 = vrot.slane %v825_v26, 4  ;;  %v833_v42 = vrot.slane %v831_v27, 7  ;;  %v604_v43 = vadd.f32 %v5095_v54, %v603_v29  ;;  %v931_v26 = vld [vmem:[#allocation2 + $0x20] sm:$0x1] }
 0x12c   : > { %v921_v45 = vsel %vm5104_vm9, %v743_v32, %v920_v13  ;;  %v751_v46 = vor.u32 %v749_v20, %v748_v34  ;;  %v753_v47 = vrot.slane %v748_v34, 4  ;;  %v3966_v49 = vpack.c.bf16 %v665_v35, %v665_v35  ;;  %v962_v34 = vld [vmem:[#allocation2 + $0x54] sm:$0xf] }
 0x12d   : > { %922 = vst [vmem:[#allocation2 + $0xc] sm:$0xf] %v921_v45  ;;  %v956_v50 = vsel %vm5104_vm9, %v828_v40, %v955_v21  ;;  %v836_v51 = vor.u32 %v834_v28, %v833_v42  ;;  %v838_v52 = vrot.slane %v833_v42, 4  ;;  %v666_v53 = vmax.f32 %v604_v43, 0.0 }
 0x12e   : > { %v752_v55 = vsel %vm5111_vm10, %v744_v33, %v751_v46  ;;  %v925_v56 = vsel %vm5003_vm2, %v753_v47, %v924_v39  ;;  %957 = vst [vmem:[#allocation2 + $0x48] sm:$0xf] %v956_v50  ;;  %v755_v57 = vshrl.u32 %v3966_v49, 16  ;;  %v675_v61 = vmax.f32 %v641_v30, 0.0 }
 0x12f   : > { %923 = vst.msk [vmem:[#allocation2 + $0x10] sm:$0xf] %vm447_vm7, %v752_v55  ;;  %926 = vst [vmem:[#allocation2 + $0x14] sm:$0x1] %v925_v56  ;;  %v837_v58 = vsel %vm5111_vm10, %v829_v41, %v836_v51  ;;  %v960_v59 = vsel %vm5003_vm2, %v838_v52, %v959_v48  ;;  %v3967_v60 = vpack.c.bf16 %v666_v53, %v666_v53  ;;  %v608_v62 = vpop.f32.mrb[8].mxu0  ;;  %v758_v1 = vshll.u32 %v3966_v49, 16 }
 0x130   : > { %958 = vst.msk [vmem:[#allocation2 + $0x4c] sm:$0xf] %vm447_vm7, %v837_v58  ;;  %961 = vst [vmem:[#allocation2 + $0x50] sm:$0x1] %v960_v59  ;;  %v757_v63 = vrot.slane %v755_v57, 7  ;;  %v644_v2 = vadd.f32 %v5095_v54, %v643_v37  ;;  %v609_v3 = vadd.f32 %v5095_v54, %v608_v62  ;;  %v4150_v4 = vpop.f32.mrb[9].mxu0  ;;  %v3976_v9 = vpack.c.bf16 %v675_v61, %v675_v61 }
 0x131   : > { %v648_v5 = vpop.f32.mrb[8].mxu1  ;;  %v763_v7 = vshrl.u32 %v3967_v60, 16  ;;  %v766_v8 = vshll.u32 %v3967_v60, 16  ;;  %v611_v10 = vpop.f32.mrb[10].mxu0  ;;  %v966_v52 = vld [vmem:[#allocation2 + $0x5c] sm:$0x1] }
 0x132   : > { %v649_v11 = vadd.f32 %v5095_v54, %v648_v5  ;;  %v4170_v12 = vpop.f32.mrb[9].mxu1  ;;  %v760_v13 = vor.u32 %v758_v1, %v757_v63  ;;  %v761_v14 = vrot.slane %v757_v63, 4  ;;  %v676_v15 = vmax.f32 %v644_v2, 0.0  ;;  %v4151_v17 = vpop.f32.mrb[11].mxu0  ;;  %v934_v53 = vld [vmem:[#allocation2 + $0x24] sm:$0xf] }
 0x133   : > { %v667_v16 = vmax.f32 %v609_v3, 0.0  ;;  %v651_v18 = vpop.f32.mrb[10].mxu1  ;;  %v765_v19 = vrot.slane %v763_v7, 7  ;;  %v840_v20 = vshrl.u32 %v3976_v9, 16  ;;  %v843_v21 = vshll.u32 %v3976_v9, 16 }
 0x134   : > { %v612_v22 = vadd.f32 %v5095_v54, %v611_v10  ;;  %v4171_v23 = vpop.f32.mrb[11].mxu1  ;;  %v928_v24 = vsel %vm5104_vm9, %v760_v13, %v927_v6  ;;  %v3977_v27 = vpack.c.bf16 %v676_v15, %v676_v15  ;;  %v677_v29 = vmax.f32 %v649_v11, 0.0  ;;  %v969_v17 = vld [vmem:[#allocation2 + $0x60] sm:$0xf] }
 0x135   : > { %v3968_v28 = vpack.c.bf16 %v667_v16, %v667_v16  ;;  %929 = vst [vmem:[#allocation2 + $0x18] sm:$0xf] %v928_v24  ;;  %v768_v30 = vor.u32 %v766_v8, %v765_v19  ;;  %v770_v31 = vrot.slane %v765_v19, 4  ;;  %v842_v32 = vrot.slane %v840_v20, 7  ;;  %v938_v16 = vld [vmem:[#allocation2 + $0x2c] sm:$0x1] }
 0x136   : > { %v668_v33 = vmax.f32 %v612_v22, 0.0  ;;  %v848_v35 = vshrl.u32 %v3977_v27, 16  ;;  %v851_v36 = vshll.u32 %v3977_v27, 16  ;;  %v3978_v48 = vpack.c.bf16 %v677_v29, %v677_v29 }
 0x137   : > { %v772_v37 = vshrl.u32 %v3968_v28, 16  ;;  %v775_v39 = vshll.u32 %v3968_v28, 16  ;;  %v769_v40 = vsel %vm5111_vm10, %v761_v14, %v768_v30  ;;  %v932_v41 = vsel %vm5003_vm2, %v770_v31, %v931_v26  ;;  %v616_v44 = vpop.f32.mrb[12].mxu0  ;;  %v656_v50 = vpop.f32.mrb[12].mxu1 }
 0x138   : > { %v845_v42 = vor.u32 %v843_v21, %v842_v32  ;;  %v846_v43 = vrot.slane %v842_v32, 4  ;;  %930 = vst.msk [vmem:[#allocation2 + $0x1c] sm:$0xf] %vm447_vm7, %v769_v40  ;;  %933 = vst [vmem:[#allocation2 + $0x20] sm:$0x1] %v932_v41  ;;  %v850_v45 = vrot.slane %v848_v35, 7  ;;  %v3969_v47 = vpack.c.bf16 %v668_v33, %v668_v33 }
 0x139   : > { %v774_v46 = vrot.slane %v772_v37, 7  ;;  %v4154_v49 = vpop.f32.mrb[13].mxu0  ;;  %v652_v55 = vadd.f32 %v5095_v54, %v651_v18  ;;  %v617_v56 = vadd.f32 %v5095_v54, %v616_v44  ;;  %v4174_v58 = vpop.f32.mrb[13].mxu1  ;;  %v657_v63 = vadd.f32 %v5095_v54, %v656_v50 }
 0x13a   : > { %v963_v51 = vsel %vm5104_vm9, %v845_v42, %v962_v34  ;;  %v619_v57 = vpop.f32.mrb[14].mxu0  ;;  %v853_v59 = vor.u32 %v851_v36, %v850_v45  ;;  %v855_v60 = vrot.slane %v850_v45, 4  ;;  %v659_v1 = vpop.f32.mrb[14].mxu1  ;;  %v780_v2 = vshrl.u32 %v3969_v47, 16 }
 0x13b   : > { %964 = vst [vmem:[#allocation2 + $0x54] sm:$0xf] %v963_v51  ;;  %v777_v61 = vor.u32 %v775_v39, %v774_v46  ;;  %v4155_v62 = vpop.f32.mrb[15].mxu0  ;;  %v783_v3 = vshll.u32 %v3969_v47, 16  ;;  %v857_v4 = vshrl.u32 %v3978_v48, 16  ;;  %v860_v5 = vshll.u32 %v3978_v48, 16 }
 0x13c   : > { %v4175_v6 = vpop.f32.mrb[15].mxu1  ;;  %v854_v7 = vsel %vm5111_vm10, %v846_v43, %v853_v59  ;;  %v967_v8 = vsel %vm5003_vm2, %v855_v60, %v966_v52  ;;  %v678_v10 = vmax.f32 %v652_v55, 0.0  ;;  %v782_v11 = vrot.slane %v780_v2, 7  ;;  %v973_v43 = vld [vmem:[#allocation2 + $0x68] sm:$0x1] }
 0x13d   : > { %v935_v9 = vsel %vm5104_vm9, %v777_v61, %v934_v53  ;;  %965 = vst.msk [vmem:[#allocation2 + $0x58] sm:$0xf] %vm447_vm7, %v854_v7  ;;  %968 = vst [vmem:[#allocation2 + $0x5c] sm:$0x1] %v967_v8  ;;  %v859_v12 = vrot.slane %v857_v4, 7  ;;  %v669_v13 = vmax.f32 %v617_v56, 0.0  ;;  %v620_v14 = vadd.f32 %v5095_v54, %v619_v57 }
 0x13e   : > { %936 = vst [vmem:[#allocation2 + $0x24] sm:$0xf] %v935_v9  ;;  %v778_v15 = vrot.slane %v774_v46, 4  ;;  %v3979_v18 = vpack.c.bf16 %v678_v10, %v678_v10  ;;  %v679_v19 = vmax.f32 %v657_v63, 0.0  ;;  %v660_v20 = vadd.f32 %v5095_v54, %v659_v1  ;;  %v941_v52 = vld [vmem:[#allocation2 + $0x30] sm:$0xf] }
 0x13f   : > { %v785_v21 = vor.u32 %v783_v3, %v782_v11  ;;  %v787_v22 = vrot.slane %v782_v11, 4  ;;  %v862_v23 = vor.u32 %v860_v5, %v859_v12  ;;  %v863_v24 = vrot.slane %v859_v12, 4  ;;  %v624_v26 = vpop.f32.mrb[16].mxu0  ;;  %v976_v62 = vld [vmem:[#allocation2 + $0x6c] sm:$0xf] }
 0x140   : > { %v865_v27 = vshrl.u32 %v3979_v18, 16  ;;  %v868_v28 = vshll.u32 %v3979_v18, 16  ;;  %v3970_v29 = vpack.c.bf16 %v669_v13, %v669_v13  ;;  %v670_v30 = vmax.f32 %v620_v14, 0.0  ;;  %v4158_v31 = vpop.f32.mrb[17].mxu0  ;;  %v945_v5 = vld [vmem:[#allocation2 + $0x38] sm:$0x1] }
 0x141   : > { %v786_v32 = vsel %vm5111_vm10, %v778_v15, %v785_v21  ;;  %v939_v33 = vsel %vm5003_vm2, %v787_v22, %v938_v16  ;;  %v970_v34 = vsel %vm5104_vm9, %v862_v23, %v969_v17  ;;  %v3980_v35 = vpack.c.bf16 %v679_v19, %v679_v19  ;;  %v627_v36 = vpop.f32.mrb[18].mxu0  ;;  %v980_v13 = vld [vmem:[#allocation2 + $0x74] sm:$0x1]  ;;  %v952_v31 = vld [vmem:[#allocation2 + $0x44] sm:$0x1] }
 0x142   : > { %937 = vst.msk [vmem:[#allocation2 + $0x28] sm:$0xf] %vm447_vm7, %v786_v32  ;;  %940 = vst [vmem:[#allocation2 + $0x2c] sm:$0x1] %v939_v33  ;;  %v867_v37 = vrot.slane %v865_v27, 7  ;;  %v789_v39 = vshrl.u32 %v3970_v29, 16  ;;  %v3971_v41 = vpack.c.bf16 %v670_v30, %v670_v30  ;;  %v625_v47 = vadd.f32 %v5095_v54, %v624_v26 }
 0x143   : > { %971 = vst [vmem:[#allocation2 + $0x60] sm:$0xf] %v970_v34  ;;  %v792_v40 = vshll.u32 %v3970_v29, 16  ;;  %v4159_v42 = vpop.f32.mrb[19].mxu0  ;;  %v874_v44 = vshrl.u32 %v3980_v35, 16  ;;  %v877_v45 = vshll.u32 %v3980_v35, 16  ;;  %v628_v8 = vadd.f32 %v5095_v54, %v627_v36 }
 0x144   : > { %v680_v46 = vmax.f32 %v660_v20, 0.0  ;;  %v870_v48 = vor.u32 %v868_v28, %v867_v37  ;;  %v872_v49 = vrot.slane %v867_v37, 4  ;;  %v791_v50 = vrot.slane %v789_v39, 7 }
 0x145   : > { %v797_v51 = vshrl.u32 %v3971_v41, 16  ;;  %v800_v53 = vshll.u32 %v3971_v41, 16  ;;  %v876_v55 = vrot.slane %v874_v44, 7  ;;  %v671_v57 = vmax.f32 %v625_v47, 0.0 }
 0x146   : > { %v3981_v56 = vpack.c.bf16 %v680_v46, %v680_v46  ;;  %v871_v58 = vsel %vm5111_vm10, %v863_v24, %v870_v48  ;;  %v974_v59 = vsel %vm5003_vm2, %v872_v49, %v973_v43  ;;  %v794_v60 = vor.u32 %v792_v40, %v791_v50  ;;  %v948_v24 = vld [vmem:[#allocation2 + $0x3c] sm:$0xf] }
 0x147   : > { %v795_v61 = vrot.slane %v791_v50, 4  ;;  %972 = vst.msk [vmem:[#allocation2 + $0x64] sm:$0xf] %vm447_vm7, %v871_v58  ;;  %975 = vst [vmem:[#allocation2 + $0x68] sm:$0x1] %v974_v59  ;;  %v799_v63 = vrot.slane %v797_v51, 7  ;;  %v879_v1 = vor.u32 %v877_v45, %v876_v55  ;;  %v3972_v7 = vpack.c.bf16 %v671_v57, %v671_v57 }
 0x148   : > { %v880_v2 = vrot.slane %v876_v55, 4  ;;  %v882_v3 = vshrl.u32 %v3981_v56, 16  ;;  %v942_v4 = vsel %vm5104_vm9, %v794_v60, %v941_v52  ;;  %v885_v6 = vshll.u32 %v3981_v56, 16 }
 0x149   : > { %943 = vst [vmem:[#allocation2 + $0x30] sm:$0xf] %v942_v4  ;;  %v802_v9 = vor.u32 %v800_v53, %v799_v63  ;;  %v804_v10 = vrot.slane %v799_v63, 4  ;;  %v977_v11 = vsel %vm5104_vm9, %v879_v1, %v976_v62  ;;  %v806_v14 = vshrl.u32 %v3972_v7, 16 }
 0x14a   : > { %v884_v12 = vrot.slane %v882_v3, 7  ;;  %978 = vst [vmem:[#allocation2 + $0x6c] sm:$0xf] %v977_v11  ;;  %v672_v15 = vmax.f32 %v628_v8, 0.0  ;;  %v809_v20 = vshll.u32 %v3972_v7, 16 }
 0x14b   : > { %v803_v16 = vsel %vm5111_vm10, %v795_v61, %v802_v9  ;;  %v946_v17 = vsel %vm5003_vm2, %v804_v10, %v945_v5  ;;  %v808_v54 = vrot.slane %v806_v14, 7 }
 0x14c   : > { %v887_v18 = vor.u32 %v885_v6, %v884_v12  ;;  %v889_v19 = vrot.slane %v884_v12, 4  ;;  %944 = vst.msk [vmem:[#allocation2 + $0x34] sm:$0xf] %vm447_vm7, %v803_v16  ;;  %947 = vst [vmem:[#allocation2 + $0x38] sm:$0x1] %v946_v17  ;;  %v3973_v21 = vpack.c.bf16 %v672_v15, %v672_v15 }
 0x14d   : > { %v811_v26 = vor.u32 %v809_v20, %v808_v54  ;;  %v812_v32 = vrot.slane %v808_v54, 4 }
 0x14e   : > { %v888_v22 = vsel %vm5111_vm10, %v880_v2, %v887_v18  ;;  %v981_v23 = vsel %vm5003_vm2, %v889_v19, %v980_v13  ;;  %v814_v27 = vshrl.u32 %v3973_v21, 16  ;;  %v817_v30 = vshll.u32 %v3973_v21, 16 }
 0x14f   : > { %979 = vst.msk [vmem:[#allocation2 + $0x70] sm:$0xf] %vm447_vm7, %v888_v22  ;;  %982 = vst [vmem:[#allocation2 + $0x74] sm:$0x1] %v981_v23  ;;  %v949_v28 = vsel %vm5104_vm9, %v811_v26, %v948_v24 }
 0x150   : > { %v816_v29 = vrot.slane %v814_v27, 7  ;;  %950 = vst [vmem:[#allocation2 + $0x3c] sm:$0xf] %v949_v28 }
 0x152   : > { %v819_v33 = vor.u32 %v817_v30, %v816_v29  ;;  %v821_v34 = vrot.slane %v816_v29, 4 }
 0x154   : > { %v820_v35 = vsel %vm5111_vm10, %v812_v32, %v819_v33  ;;  %v953_v36 = vsel %vm5003_vm2, %v821_v34, %v952_v31 }
 0x155   : > { %951 = vst.msk [vmem:[#allocation2 + $0x40] sm:$0xf] %vm447_vm7, %v820_v35  ;;  %954 = vst [vmem:[#allocation2 + $0x44] sm:$0x1] %v953_v36 }
 0x156 PF: > { %p3753_p6 = scmp.ne.s32.totalorder %s4803_s12, 1 }
 0x157   : > { %v4694_v25 = vld [vmem:[%s5940_s1] sm:$0xff] (!%p3753_p6)   ;;  %v4827_v37 = vmov (!%p3753_p6), 0.0   ;;  %s3754_s30 = sadd.s32 (!%p3753_p6), 4294967295, %s3713_s19  ;;  %vm988_vm11 = vcmask (!%p3753_p6), 60416   ;;  %vm4828_vm12 = vmmov (!%p3753_p6), 0   ;;  %v4829_v38 = vmov (!%p3753_p6), 0  }
 0x158   : > { %986 = sbr.rel (%p3753_p6) target bundleno = 614 (0x266), region = 68  ;;  %4176 = vmatprep.subr.bf16.mxu0 (!%p3753_p6), %v4827_v37  ;;  %4414 = vmatprep.subr.bf16.mxu1 (!%p3753_p6), %v4827_v37  ;;  %s3982_s20 = sshll.u32 (!%p3753_p6), %s3754_s30, 3  ;;  %989 = vst.msk [vmem:[#allocation2 + $0x6c] sm:$0xf] (!%p3753_p6), %vm988_vm11, %v4829_v38  ;;  %990 = vst.msk [vmem:[#allocation2 + $0x70] sm:$0xf] (!%p3753_p6), %vm988_vm11, %v4829_v38 }
 0x159   : > { %4177 = vmatpush3.bf16.msra.mxu0 (!%p3753_p6), %v4694_v25  ;;  %4178 = vmatprep.mubr.msk.bf16.mxu0 (!%p3753_p6), %vm4828_vm12, %v4827_v37  ;;  %992 = vst.msk [vmem:[#allocation2 + $0x74] sm:$0x1] (!%p3753_p6), %vm378_vm0, %v4829_v38  ;;  %s996_s22 = scalar_lea.vmem (!%p3753_p6), %s4991_s17, %s3982_s20 [#allocation3]  ;;  %vm1075_vm13 = vcmask (!%p3753_p6), 130048   ;;  %v5221_v48 = vld [vmem:[%s5943_s4] ss:$0 sm:$0xff] (!%p3753_p6)  ;;  %vm5230_vm15 = vmand (!%p3753_p6), %vm988_vm11, %vm411_vm3 }
 0x15a   : > { %4415 = vmatpush3.bf16.msra.mxu1 (!%p3753_p6), %v4694_v25  ;;  %4198 = vmatprep.mubr.msk.bf16.mxu1 (!%p3753_p6), %vm4828_vm12, %v4827_v37  ;;  %v4695_v39 = vld [vmem:[%s996_s22] sm:$0xff] (!%p3753_p6)   ;;  %v4696_v40 = vld [vmem:[%s996_s22 + $0x28] sm:$0xff] (!%p3753_p6)   ;;  %v4698_v42 = vld [vmem:[%s996_s22 + $0x30] sm:$0xff] (!%p3753_p6)   ;;  %vm1280_vm14 = vsmask.f32 (!%p3753_p6), 4368 }
 0x15b   : > { %v4697_v41 = vld [vmem:[%s996_s22 + $0x8] sm:$0xff] (!%p3753_p6)   ;;  %v4699_v43 = vld [vmem:[%s996_s22 + $0x10] sm:$0xff] (!%p3753_p6)   ;;  %v4700_v44 = vld [vmem:[%s996_s22 + $0x38] sm:$0xff] (!%p3753_p6)  }
 0x15c   : > { %4179 = vmatmul.mubr.msk.bf16.vlgmr.msra.gmra.mrb[0].mxu0 (!%p3753_p6), %vm1075_vm13, %v4695_v39  ;;  %v4701_v45 = vld [vmem:[%s996_s22 + $0x18] sm:$0xff] (!%p3753_p6)   ;;  %v4702_v46 = vld [vmem:[%s996_s22 + $0x40] sm:$0xff] (!%p3753_p6)   ;;  %vm5237_vm0 = vmor (!%p3753_p6), %vm379_vm1, %vm1280_vm14 }
 0x15d   : > { %4199 = vmatmul.mubr.msk.bf16.vlgmr.msra.gmra.mrb[0].mxu1 (!%p3753_p6), %vm1075_vm13, %v4696_v40  ;;  %4182 = vmatprep.mubr.msk.bf16.mxu0 (!%p3753_p6), %vm4828_vm12, %v4827_v37  ;;  %v4703_v47 = vld [vmem:[%s996_s22 + $0x20] sm:$0xff] (!%p3753_p6)   ;;  %v1499_v16 = vld [vmem:[#allocation2 + $0x3c] sm:$0xf] (!%p3753_p6)  ;;  %v1468_v34 = vld [vmem:[#allocation2 + $0x8] sm:$0x1] (!%p3753_p6) }
 0x15e   : > { %4202 = vmatprep.mubr.msk.bf16.mxu1 (!%p3753_p6), %vm4828_vm12, %v4827_v37  ;;  %v1464_v8 = vld [vmem:[#allocation2] sm:$0xf] (!%p3753_p6) }
 0x164   : > { %4183 = vmatmul.mubr.msk.bf16.gmra.mrb[4].mxu0 %vm1075_vm13, %v4697_v41 }
 0x165   : > { %4203 = vmatmul.mubr.msk.bf16.gmra.mrb[4].mxu1 %vm1075_vm13, %v4698_v42  ;;  %4186 = vmatprep.mubr.msk.bf16.mxu0 %vm4828_vm12, %v4827_v37  ;;  %v1503_v42 = vld [vmem:[#allocation2 + $0x44] sm:$0x1] }
 0x166   : > { %4206 = vmatprep.mubr.msk.bf16.mxu1 %vm4828_vm12, %v4827_v37 }
 0x16c   : > { %4187 = vmatmul.mubr.msk.bf16.gmra.mrb[8].mxu0 %vm1075_vm13, %v4699_v43 }
 0x16d   : > { %4207 = vmatmul.mubr.msk.bf16.gmra.mrb[8].mxu1 %vm1075_vm13, %v4700_v44  ;;  %4190 = vmatprep.mubr.msk.bf16.mxu0 %vm4828_vm12, %v4827_v37 }
 0x16e   : > { %4210 = vmatprep.mubr.msk.bf16.mxu1 %vm4828_vm12, %v4827_v37 }
 0x174   : > { %4191 = vmatmul.mubr.msk.bf16.gmra.mrb[12].mxu0 %vm1075_vm13, %v4701_v45 }
 0x175   : > { %4211 = vmatmul.mubr.msk.bf16.gmra.mrb[12].mxu1 %vm1075_vm13, %v4702_v46  ;;  %4194 = vmatprep.mubr.msk.bf16.mxu0 %vm4828_vm12, %v4827_v37 }
 0x17c   : > { %4195 = vmatmul.mubr.msk.bf16.gmra.mrb[16].mxu0 %vm1075_vm13, %v4703_v47 }
 0x22f   : > { %v1137_v49 = vpop.f32.mrb[0].mxu0 }
 0x230   : > { %v1138_v50 = vadd.f32 %v5221_v48, %v1137_v49  ;;  %v4180_v51 = vpop.f32.mrb[1].mxu0  ;;  %v1177_v52 = vpop.f32.mrb[0].mxu1 }
 0x231   : > { %v1140_v53 = vpop.f32.mrb[2].mxu0  ;;  %v1178_v55 = vadd.f32 %v5221_v48, %v1177_v52  ;;  %v4200_v56 = vpop.f32.mrb[1].mxu1 }
 0x232   : > { %v1208_v57 = vmax.f32 %v1138_v50, 0.0  ;;  %v1141_v58 = vadd.f32 %v5221_v48, %v1140_v53  ;;  %v4181_v59 = vpop.f32.mrb[3].mxu0  ;;  %v1180_v60 = vpop.f32.mrb[2].mxu1 }
 0x233   : > { %v1218_v61 = vmax.f32 %v1178_v55, 0.0  ;;  %v1181_v62 = vadd.f32 %v5221_v48, %v1180_v60  ;;  %v4201_v63 = vpop.f32.mrb[3].mxu1 }
 0x234   : > { %v3983_v1 = vpack.c.bf16 %v1208_v57, %v1208_v57  ;;  %v1209_v2 = vmax.f32 %v1141_v58, 0.0 }
 0x235   : > { %v3993_v3 = vpack.c.bf16 %v1218_v61, %v1218_v61  ;;  %v1219_v4 = vmax.f32 %v1181_v62, 0.0 }
 0x236   : > { %v1283_v5 = vshrl.u32 %v3983_v1, 16  ;;  %v3984_v6 = vpack.c.bf16 %v1209_v2, %v1209_v2  ;;  %v1286_v7 = vshll.u32 %v3983_v1, 16  ;;  %v1471_v1 = vld [vmem:[#allocation2 + $0xc] sm:$0xf] }
 0x237   : > { %v1368_v9 = vshrl.u32 %v3993_v3, 16  ;;  %v1371_v10 = vshll.u32 %v3993_v3, 16  ;;  %v3994_v11 = vpack.c.bf16 %v1219_v4, %v1219_v4  ;;  %v1145_v12 = vpop.f32.mrb[4].mxu0 }
 0x238   : > { %v1285_v13 = vrot.slane %v1283_v5, 7  ;;  %v1291_v14 = vshrl.u32 %v3984_v6, 16  ;;  %v1294_v15 = vshll.u32 %v3984_v6, 16  ;;  %v1146_v17 = vadd.f32 %v5221_v48, %v1145_v12  ;;  %v4184_v18 = vpop.f32.mrb[5].mxu0  ;;  %v1185_v19 = vpop.f32.mrb[4].mxu1 }
 0x239   : > { %v1370_v20 = vrot.slane %v1368_v9, 7  ;;  %v1376_v21 = vshrl.u32 %v3994_v11, 16  ;;  %v1379_v22 = vshll.u32 %v3994_v11, 16  ;;  %v1148_v23 = vpop.f32.mrb[6].mxu0  ;;  %v1186_v24 = vadd.f32 %v5221_v48, %v1185_v19  ;;  %v4204_v26 = vpop.f32.mrb[5].mxu1 }
 0x23a   : > { %v1288_v27 = vor.u32 %v1286_v7, %v1285_v13  ;;  %v1289_v28 = vrot.slane %v1285_v13, 4  ;;  %v1293_v29 = vrot.slane %v1291_v14, 7  ;;  %v1210_v30 = vmax.f32 %v1146_v17, 0.0  ;;  %v4185_v31 = vpop.f32.mrb[7].mxu0  ;;  %v1188_v32 = vpop.f32.mrb[6].mxu1 }
 0x23b   : > { %v1373_v35 = vor.u32 %v1371_v10, %v1370_v20  ;;  %v1374_v36 = vrot.slane %v1370_v20, 4  ;;  %v1378_v25 = vrot.slane %v1376_v21, 7  ;;  %v1149_v37 = vadd.f32 %v5221_v48, %v1148_v23  ;;  %v4205_v38 = vpop.f32.mrb[7].mxu1  ;;  %v1475_v20 = vld [vmem:[#allocation2 + $0x14] sm:$0x1] }
 0x23c   : > { %v1465_v39 = vsel %vm5230_vm15, %v1288_v27, %v1464_v8  ;;  %v1296_v40 = vor.u32 %v1294_v15, %v1293_v29  ;;  %v1298_v41 = vrot.slane %v1293_v29, 4  ;;  %v3985_v43 = vpack.c.bf16 %v1210_v30, %v1210_v30  ;;  %v1506_v29 = vld [vmem:[#allocation2 + $0x48] sm:$0xf] }
 0x23d   : > { %1466 = vst [vmem:[#allocation2] sm:$0xf] %v1465_v39  ;;  %v1500_v44 = vsel %vm5230_vm15, %v1373_v35, %v1499_v16  ;;  %v1381_v45 = vor.u32 %v1379_v22, %v1378_v25  ;;  %v1383_v46 = vrot.slane %v1378_v25, 4  ;;  %v1211_v47 = vmax.f32 %v1149_v37, 0.0 }
 0x23e   : > { %v1297_v49 = vsel %vm5237_vm0, %v1289_v28, %v1296_v40  ;;  %v1469_v50 = vsel %vm5003_vm2, %v1298_v41, %v1468_v34  ;;  %1501 = vst [vmem:[#allocation2 + $0x3c] sm:$0xf] %v1500_v44  ;;  %v1300_v51 = vshrl.u32 %v3985_v43, 16  ;;  %v1220_v56 = vmax.f32 %v1186_v24, 0.0 }
 0x23f   : > { %1467 = vst.msk [vmem:[#allocation2 + $0x4] sm:$0xf] %vm988_vm11, %v1297_v49  ;;  %1470 = vst [vmem:[#allocation2 + $0x8] sm:$0x1] %v1469_v50  ;;  %v1382_v52 = vsel %vm5237_vm0, %v1374_v36, %v1381_v45  ;;  %v1504_v53 = vsel %vm5003_vm2, %v1383_v46, %v1503_v42  ;;  %v3986_v55 = vpack.c.bf16 %v1211_v47, %v1211_v47  ;;  %v1153_v57 = vpop.f32.mrb[8].mxu0  ;;  %v1303_v59 = vshll.u32 %v3985_v43, 16 }
 0x240   : > { %1502 = vst.msk [vmem:[#allocation2 + $0x40] sm:$0xf] %vm988_vm11, %v1382_v52  ;;  %1505 = vst [vmem:[#allocation2 + $0x44] sm:$0x1] %v1504_v53  ;;  %v1302_v58 = vrot.slane %v1300_v51, 7  ;;  %v1189_v60 = vadd.f32 %v5221_v48, %v1188_v32  ;;  %v1154_v61 = vadd.f32 %v5221_v48, %v1153_v57  ;;  %v4188_v62 = vpop.f32.mrb[9].mxu0  ;;  %v3995_v4 = vpack.c.bf16 %v1220_v56, %v1220_v56 }
 0x241   : > { %v1193_v63 = vpop.f32.mrb[8].mxu1  ;;  %v1308_v2 = vshrl.u32 %v3986_v55, 16  ;;  %v1311_v3 = vshll.u32 %v3986_v55, 16  ;;  %v1156_v5 = vpop.f32.mrb[10].mxu0  ;;  %v1510_v46 = vld [vmem:[#allocation2 + $0x50] sm:$0x1] }
 0x242   : > { %v1194_v6 = vadd.f32 %v5221_v48, %v1193_v63  ;;  %v4208_v7 = vpop.f32.mrb[9].mxu1  ;;  %v1305_v8 = vor.u32 %v1303_v59, %v1302_v58  ;;  %v1306_v9 = vrot.slane %v1302_v58, 4  ;;  %v1221_v10 = vmax.f32 %v1189_v60, 0.0  ;;  %v4189_v12 = vpop.f32.mrb[11].mxu0  ;;  %v1478_v47 = vld [vmem:[#allocation2 + $0x18] sm:$0xf] }
 0x243   : > { %v1212_v11 = vmax.f32 %v1154_v61, 0.0  ;;  %v1196_v13 = vpop.f32.mrb[10].mxu1  ;;  %v1310_v14 = vrot.slane %v1308_v2, 7  ;;  %v1385_v15 = vshrl.u32 %v3995_v4, 16  ;;  %v1388_v16 = vshll.u32 %v3995_v4, 16 }
 0x244   : > { %v1157_v17 = vadd.f32 %v5221_v48, %v1156_v5  ;;  %v4209_v18 = vpop.f32.mrb[11].mxu1  ;;  %v1472_v19 = vsel %vm5230_vm15, %v1305_v8, %v1471_v1  ;;  %v3996_v21 = vpack.c.bf16 %v1221_v10, %v1221_v10  ;;  %v1222_v23 = vmax.f32 %v1194_v6, 0.0  ;;  %v1513_v12 = vld [vmem:[#allocation2 + $0x54] sm:$0xf] }
 0x245   : > { %v3987_v22 = vpack.c.bf16 %v1212_v11, %v1212_v11  ;;  %1473 = vst [vmem:[#allocation2 + $0xc] sm:$0xf] %v1472_v19  ;;  %v1313_v24 = vor.u32 %v1311_v3, %v1310_v14  ;;  %v1315_v26 = vrot.slane %v1310_v14, 4  ;;  %v1387_v27 = vrot.slane %v1385_v15, 7  ;;  %v1482_v11 = vld [vmem:[#allocation2 + $0x20] sm:$0x1] }
 0x246   : > { %v1213_v28 = vmax.f32 %v1157_v17, 0.0  ;;  %v1393_v30 = vshrl.u32 %v3996_v21, 16  ;;  %v1396_v31 = vshll.u32 %v3996_v21, 16  ;;  %v3997_v42 = vpack.c.bf16 %v1222_v23, %v1222_v23 }
 0x247   : > { %v1317_v32 = vshrl.u32 %v3987_v22, 16  ;;  %v1320_v34 = vshll.u32 %v3987_v22, 16  ;;  %v1314_v35 = vsel %vm5237_vm0, %v1306_v9, %v1313_v24  ;;  %v1476_v36 = vsel %vm5003_vm2, %v1315_v26, %v1475_v20  ;;  %v1161_v38 = vpop.f32.mrb[12].mxu0 }
 0x248   : > { %v1390_v25 = vor.u32 %v1388_v16, %v1387_v27  ;;  %v1391_v37 = vrot.slane %v1387_v27, 4  ;;  %1474 = vst.msk [vmem:[#allocation2 + $0x10] sm:$0xf] %vm988_vm11, %v1314_v35  ;;  %1477 = vst [vmem:[#allocation2 + $0x14] sm:$0x1] %v1476_v36  ;;  %v1395_v39 = vrot.slane %v1393_v30, 7  ;;  %v3988_v41 = vpack.c.bf16 %v1213_v28, %v1213_v28 }
 0x249   : > { %v1319_v40 = vrot.slane %v1317_v32, 7  ;;  %v4192_v43 = vpop.f32.mrb[13].mxu0  ;;  %v1201_v44 = vpop.f32.mrb[12].mxu1  ;;  %v1197_v49 = vadd.f32 %v5221_v48, %v1196_v13  ;;  %v1162_v50 = vadd.f32 %v5221_v48, %v1161_v38  ;;  %v1402_v62 = vshrl.u32 %v3997_v42, 16 }
 0x24a   : > { %v1507_v45 = vsel %vm5230_vm15, %v1390_v25, %v1506_v29  ;;  %v1164_v51 = vpop.f32.mrb[14].mxu0  ;;  %v4212_v52 = vpop.f32.mrb[13].mxu1  ;;  %v1398_v53 = vor.u32 %v1396_v31, %v1395_v39  ;;  %v1400_v55 = vrot.slane %v1395_v39, 4  ;;  %v1202_v58 = vadd.f32 %v5221_v48, %v1201_v44 }
 0x24b   : > { %1508 = vst [vmem:[#allocation2 + $0x48] sm:$0xf] %v1507_v45  ;;  %v1322_v56 = vor.u32 %v1320_v34, %v1319_v40  ;;  %v4193_v57 = vpop.f32.mrb[15].mxu0  ;;  %v1204_v59 = vpop.f32.mrb[14].mxu1  ;;  %v1325_v60 = vshrl.u32 %v3988_v41, 16  ;;  %v1328_v61 = vshll.u32 %v3988_v41, 16  ;;  %v1165_v9 = vadd.f32 %v5221_v48, %v1164_v51 }
 0x24c   : > { %v1405_v63 = vshll.u32 %v3997_v42, 16  ;;  %v4213_v1 = vpop.f32.mrb[15].mxu1  ;;  %v1399_v2 = vsel %vm5237_vm0, %v1391_v37, %v1398_v53  ;;  %v1511_v3 = vsel %vm5003_vm2, %v1400_v55, %v1510_v46  ;;  %v1223_v5 = vmax.f32 %v1197_v49, 0.0  ;;  %v1517_v37 = vld [vmem:[#allocation2 + $0x5c] sm:$0x1] }
 0x24d   : > { %v1479_v4 = vsel %vm5230_vm15, %v1322_v56, %v1478_v47  ;;  %1509 = vst.msk [vmem:[#allocation2 + $0x4c] sm:$0xf] %vm988_vm11, %v1399_v2  ;;  %1512 = vst [vmem:[#allocation2 + $0x50] sm:$0x1] %v1511_v3  ;;  %v1327_v6 = vrot.slane %v1325_v60, 7  ;;  %v1404_v7 = vrot.slane %v1402_v62, 7  ;;  %v1205_v15 = vadd.f32 %v5221_v48, %v1204_v59 }
 0x24e   : > { %1480 = vst [vmem:[#allocation2 + $0x18] sm:$0xf] %v1479_v4  ;;  %v1214_v8 = vmax.f32 %v1162_v50, 0.0  ;;  %v1323_v10 = vrot.slane %v1319_v40, 4  ;;  %v3998_v13 = vpack.c.bf16 %v1223_v5, %v1223_v5  ;;  %v1224_v14 = vmax.f32 %v1202_v58, 0.0 }
 0x24f   : > { %v1330_v16 = vor.u32 %v1328_v61, %v1327_v6  ;;  %v1332_v17 = vrot.slane %v1327_v6, 4  ;;  %v1407_v18 = vor.u32 %v1405_v63, %v1404_v7  ;;  %v1408_v19 = vrot.slane %v1404_v7, 4  ;;  %v1169_v20 = vpop.f32.mrb[16].mxu0  ;;  %v1485_v46 = vld [vmem:[#allocation2 + $0x24] sm:$0xf] }
 0x250   : > { %v1410_v21 = vshrl.u32 %v3998_v13, 16  ;;  %v1413_v22 = vshll.u32 %v3998_v13, 16  ;;  %v3989_v23 = vpack.c.bf16 %v1214_v8, %v1214_v8  ;;  %v1215_v24 = vmax.f32 %v1165_v9, 0.0  ;;  %v4196_v26 = vpop.f32.mrb[17].mxu0  ;;  %v1520_v57 = vld [vmem:[#allocation2 + $0x60] sm:$0xf] }
 0x251   : > { %v1331_v27 = vsel %vm5237_vm0, %v1323_v10, %v1330_v16  ;;  %v1483_v28 = vsel %vm5003_vm2, %v1332_v17, %v1482_v11  ;;  %v1514_v29 = vsel %vm5230_vm15, %v1407_v18, %v1513_v12  ;;  %v3999_v30 = vpack.c.bf16 %v1224_v14, %v1224_v14  ;;  %v1172_v31 = vpop.f32.mrb[18].mxu0  ;;  %v1489_v63 = vld [vmem:[#allocation2 + $0x2c] sm:$0x1]  ;;  %v1524_v8 = vld [vmem:[#allocation2 + $0x68] sm:$0x1] }
 0x252   : > { %1481 = vst.msk [vmem:[#allocation2 + $0x1c] sm:$0xf] %vm988_vm11, %v1331_v27  ;;  %1484 = vst [vmem:[#allocation2 + $0x20] sm:$0x1] %v1483_v28  ;;  %v1412_v32 = vrot.slane %v1410_v21, 7  ;;  %v1334_v34 = vshrl.u32 %v3989_v23, 16  ;;  %v3990_v36 = vpack.c.bf16 %v1215_v24, %v1215_v24  ;;  %v1170_v41 = vadd.f32 %v5221_v48, %v1169_v20 }
 0x253   : > { %1515 = vst [vmem:[#allocation2 + $0x54] sm:$0xf] %v1514_v29  ;;  %v1337_v35 = vshll.u32 %v3989_v23, 16  ;;  %v4197_v25 = vpop.f32.mrb[19].mxu0  ;;  %v1419_v38 = vshrl.u32 %v3999_v30, 16  ;;  %v1422_v39 = vshll.u32 %v3999_v30, 16  ;;  %v1173_v3 = vadd.f32 %v5221_v48, %v1172_v31 }
 0x254   : > { %v1225_v40 = vmax.f32 %v1205_v15, 0.0  ;;  %v1415_v42 = vor.u32 %v1413_v22, %v1412_v32  ;;  %v1417_v43 = vrot.slane %v1412_v32, 4  ;;  %v1336_v44 = vrot.slane %v1334_v34, 7  ;;  %v1496_v26 = vld [vmem:[#allocation2 + $0x38] sm:$0x1] }
 0x255   : > { %v1342_v45 = vshrl.u32 %v3990_v36, 16  ;;  %v1345_v47 = vshll.u32 %v3990_v36, 16  ;;  %v1421_v49 = vrot.slane %v1419_v38, 7  ;;  %v1216_v51 = vmax.f32 %v1170_v41, 0.0 }
 0x256   : > { %v4000_v50 = vpack.c.bf16 %v1225_v40, %v1225_v40  ;;  %v1416_v52 = vsel %vm5237_vm0, %v1408_v19, %v1415_v42  ;;  %v1518_v53 = vsel %vm5003_vm2, %v1417_v43, %v1517_v37  ;;  %v1339_v55 = vor.u32 %v1337_v35, %v1336_v44  ;;  %v1492_v19 = vld [vmem:[#allocation2 + $0x30] sm:$0xf] }
 0x257   : > { %v1340_v56 = vrot.slane %v1336_v44, 4  ;;  %1516 = vst.msk [vmem:[#allocation2 + $0x58] sm:$0xf] %vm988_vm11, %v1416_v52  ;;  %1519 = vst [vmem:[#allocation2 + $0x5c] sm:$0x1] %v1518_v53  ;;  %v1344_v58 = vrot.slane %v1342_v45, 7  ;;  %v1424_v59 = vor.u32 %v1422_v39, %v1421_v49  ;;  %v3991_v2 = vpack.c.bf16 %v1216_v51, %v1216_v51 }
 0x258   : > { %v1425_v60 = vrot.slane %v1421_v49, 4  ;;  %v1427_v61 = vshrl.u32 %v4000_v50, 16  ;;  %v1486_v62 = vsel %vm5230_vm15, %v1339_v55, %v1485_v46  ;;  %v1430_v1 = vshll.u32 %v4000_v50, 16 }
 0x259   : > { %1487 = vst [vmem:[#allocation2 + $0x24] sm:$0xf] %v1486_v62  ;;  %v1347_v4 = vor.u32 %v1345_v47, %v1344_v58  ;;  %v1349_v5 = vrot.slane %v1344_v58, 4  ;;  %v1521_v6 = vsel %vm5230_vm15, %v1424_v59, %v1520_v57  ;;  %v1351_v9 = vshrl.u32 %v3991_v2, 16 }
 0x25a   : > { %v1429_v7 = vrot.slane %v1427_v61, 7  ;;  %1522 = vst [vmem:[#allocation2 + $0x60] sm:$0xf] %v1521_v6  ;;  %v1217_v10 = vmax.f32 %v1173_v3, 0.0  ;;  %v1354_v15 = vshll.u32 %v3991_v2, 16 }
 0x25b   : > { %v1348_v11 = vsel %vm5237_vm0, %v1340_v56, %v1347_v4  ;;  %v1490_v12 = vsel %vm5003_vm2, %v1349_v5, %v1489_v63  ;;  %v1353_v48 = vrot.slane %v1351_v9, 7 }
 0x25c   : > { %v1432_v13 = vor.u32 %v1430_v1, %v1429_v7  ;;  %v1434_v14 = vrot.slane %v1429_v7, 4  ;;  %1488 = vst.msk [vmem:[#allocation2 + $0x28] sm:$0xf] %vm988_vm11, %v1348_v11  ;;  %1491 = vst [vmem:[#allocation2 + $0x2c] sm:$0x1] %v1490_v12  ;;  %v3992_v16 = vpack.c.bf16 %v1217_v10, %v1217_v10 }
 0x25d   : > { %v1356_v20 = vor.u32 %v1354_v15, %v1353_v48  ;;  %v1357_v27 = vrot.slane %v1353_v48, 4 }
 0x25e   : > { %v1433_v17 = vsel %vm5237_vm0, %v1425_v60, %v1432_v13  ;;  %v1525_v18 = vsel %vm5003_vm2, %v1434_v14, %v1524_v8  ;;  %v1359_v21 = vshrl.u32 %v3992_v16, 16  ;;  %v1362_v24 = vshll.u32 %v3992_v16, 16 }
 0x25f   : > { %1523 = vst.msk [vmem:[#allocation2 + $0x64] sm:$0xf] %vm988_vm11, %v1433_v17  ;;  %1526 = vst [vmem:[#allocation2 + $0x68] sm:$0x1] %v1525_v18  ;;  %v1493_v22 = vsel %vm5230_vm15, %v1356_v20, %v1492_v19 }
 0x260   : > { %v1361_v23 = vrot.slane %v1359_v21, 7  ;;  %1494 = vst [vmem:[#allocation2 + $0x30] sm:$0xf] %v1493_v22 }
 0x262   : > { %v1364_v28 = vor.u32 %v1362_v24, %v1361_v23  ;;  %v1366_v29 = vrot.slane %v1361_v23, 4 }
 0x264   : > { %v1365_v30 = vsel %vm5237_vm0, %v1357_v27, %v1364_v28  ;;  %v1497_v31 = vsel %vm5003_vm2, %v1366_v29, %v1496_v26 }
 0x265   : > { %1495 = vst.msk [vmem:[#allocation2 + $0x34] sm:$0xf] %vm988_vm11, %v1365_v30  ;;  %1498 = vst [vmem:[#allocation2 + $0x38] sm:$0x1] %v1497_v31 }
 0x266 PF: > { %vm1804_vm1 = vcmask 1043456   ;;  %v5319_v54 = vld [vmem:[%s5941_s2 + $0xc] sm:$0xf]  ;;  %v5329_v0 = vld [vmem:[#allocation2 + $0x10] sm:$0xf]  ;;  %vm1779_vm2 = vcmask 64512  }
 0x267   : > { %v5321_v32 = vld [vmem:[#allocation2 + $0xc] sm:$0xf]  ;;  %4597 = vmatprep.subr.msk.bf16.mxu0 %vm1804_vm1, %v5319_v54  ;;  %v5327_v33 = vsel %vm1804_vm1, %v5319_v54, 0  ;;  %v1595_v36 = vshll.u32 %v5329_v0, 16  ;;  %v1599_v25 = vshrl.u32 %v5329_v0, 16  ;;  %v2089_v47 = vrot.slane %v5329_v0, 5 }
 0x268   : > { %v1586_v34 = vshrl.u32 %v5321_v32, 16  ;;  %v1589_v35 = vshll.u32 %v5321_v32, 16  ;;  %4269 = vmatpush3.bf16.msra.mxu0 %v5327_v33  ;;  %v5338_v37 = vcombine.low %v5321_v32, %v5329_v0  ;;  %v5340_v38 = vld [vmem:[#allocation2 + $0x18] sm:$0xf]  ;;  %v5342_v41 = vld [vmem:[#allocation2 + $0x1c] sm:$0xf] }
 0x269   : > { %v5344_v42 = vrot.slane %v1595_v36, 5  ;;  %v1601_v43 = vrot.slane %v1599_v25, 4  ;;  %v3863_v44 = vld [vmem:[%s5941_s2 + $0x10] sm:$0xf]  ;;  %v3829_v46 = vrot.slane %v5321_v32, 9  ;;  %v5355_v49 = vcombine.low %v5340_v38, %v5342_v41  ;;  %s4002_s19 = sshll.u32 %s4803_s12, 6 }
 0x26a   : > { %v1588_v39 = vrot.slane %v1586_v34, 4  ;;  %v1591_v40 = vrot.slane %v1589_v35, 5  ;;  %4270 = vmatprep.mubr.msk.bf16.mxu0 %vm1779_vm2, %v5338_v37  ;;  %4599 = vmatprep.subr.msk.bf16.mxu0 %vm1804_vm1, %v3863_v44  ;;  %v3795_v50 = vld [vmem:[%s5941_s2 + $0x4] sm:$0xf]  ;;  %v5361_v51 = vld [vmem:[#allocation2] sm:$0xf]  ;;  %s5802_s25 = scalar_lea.vmem %s4991_s17, %s4002_s19 [#allocation3] }
 0x26b   : > { %v1602_v52 = vor.u32 %v1601_v43, %v5344_v42  ;;  %v2461_v53 = vsel %vm1804_vm1, %v3863_v44, 0  ;;  %4594 = vmatprep.subr.msk.bf16.mxu1 %vm1804_vm1, %v3795_v50  ;;  %v1806_v55 = vsel %vm1804_vm1, %v3795_v50, 0  ;;  %v5367_v56 = vld [vmem:[#allocation2 + $0x4] sm:$0xf]  ;;  %v5369_v57 = vld [vmem:[#allocation2 + $0x8] sm:$0x1]  ;;  %4271 = vmatmul.mubr.msk.bf16.vlgmr.msra.gmra.mrb[0].mxu0 %vm1779_vm2, %v5355_v49 }
 0x26c   : > { %v1592_v45 = vor.u32 %v1591_v40, %v1588_v39  ;;  %v1610_v58 = vshrl.u32 %v5340_v38, 16  ;;  %v1613_v59 = vshll.u32 %v5340_v38, 16  ;;  %4215 = vmatpush3.bf16.msra.mxu1 %v1806_v55  ;;  %vm1558_vm3 = vsmask.f32 3328  ;;  %4287 = vmatpush3.bf16.msra.mxu0 %v2461_v53  ;;  %v5378_v1 = vld [vmem:[#allocation2 + $0x24] sm:$0xf] }
 0x26d   : > { %vm1559_vm4 = vsmask.f32 7440  ;;  %v1562_v61 = vshrl.u32 %v5361_v51, 16  ;;  %v1565_v62 = vshll.u32 %v5361_v51, 16  ;;  %v1571_v63 = vshll.u32 %v5367_v56, 16 }
 0x26e   : > { %v1593_v60 = vrot.slane %v1592_v45, 4  ;;  %v1603_v2 = vrot.slane %v1602_v52, 4  ;;  %v1623_v3 = vshrl.u32 %v5342_v41, 16  ;;  %vm5381_vm5 = vmor %vm1558_vm3, %vm1559_vm4  ;;  %v1575_v5 = vshrl.u32 %v5367_v56, 16  ;;  %v5387_v7 = vld [vmem:[#allocation2 + $0x28] sm:$0xf] }
 0x26f   : > { %v1581_v6 = vshll.u32 %v5369_v57, 16  ;;  %v1564_v8 = vrot.slane %v1562_v61, 4  ;;  %v1567_v9 = vrot.slane %v1565_v62, 5  ;;  %v1573_v10 = vrot.slane %v1571_v63, 5  ;;  %v5390_v12 = vld [vmem:[#allocation2 + $0x14] sm:$0x1] }
 0x270   : > { %v1634_v11 = vshrl.u32 %v5378_v1, 16  ;;  %v1577_v13 = vrot.slane %v1575_v5, 4  ;;  %v1637_v48 = vshll.u32 %v5378_v1, 16  ;;  %v5395_v15 = vcombine.low %v5378_v1, %v5387_v7  ;;  %v5397_v16 = vld [vmem:[#allocation2 + $0x30] sm:$0xf] }
 0x271   : > { %v1583_v14 = vrot.slane %v1581_v6, 5  ;;  %v1568_v17 = vor.u32 %v1567_v9, %v1564_v8  ;;  %v1647_v18 = vshrl.u32 %v5387_v7, 16  ;;  %v1598_v19 = vsel %vm5381_vm5, %v1593_v60, %v5344_v42  ;;  %v5404_v21 = vld [vmem:[#allocation2 + $0x34] sm:$0xf]  ;;  %v5406_v22 = vld [vmem:[#allocation2 + $0x20] sm:$0x1] }
 0x272   : > { %v1605_v20 = vshll.u32 %v5390_v12, 16  ;;  %v1578_v23 = vor.u32 %v1577_v13, %v1573_v10  ;;  %4274 = vmatprep.mubr.msk.bf16.mxu0 %vm1779_vm2, %v5395_v15  ;;  %v1658_v24 = vshrl.u32 %v5397_v16, 16  ;;  %v1661_v26 = vshll.u32 %v5397_v16, 16  ;;  %v3874_v28 = vld [vmem:[%s5941_s2 + $0x14] sm:$0xf] }
 0x273   : > { %v5414_v27 = vcombine.low %v5397_v16, %v5404_v21  ;;  %v1569_v29 = vrot.slane %v1568_v17, 4  ;;  %v1612_v31 = vrot.slane %v1610_v58, 4  ;;  %v1615_v34 = vrot.slane %v1613_v59, 5  ;;  %4600 = vmatprep.subr.msk.bf16.mxu0 %vm1804_vm1, %v3874_v28  ;;  %v5429_v45 = vld [vmem:[#allocation2 + $0x2c] sm:$0x1] }
 0x274   : > { %v1607_v30 = vrot.slane %v1605_v20, 5  ;;  %v1579_v35 = vrot.slane %v1578_v23, 4  ;;  %v1619_v36 = vshll.u32 %v5342_v41, 16  ;;  %v1625_v25 = vrot.slane %v1623_v3, 4  ;;  %v5436_v5 = vld [vmem:[#allocation2 + $0x38] sm:$0x1] }
 0x275   : > { %4275 = vmatmul.mubr.msk.bf16.gmra.mrb[4].mxu0 %vm1779_vm2, %v5414_v27  ;;  %v1629_v39 = vshll.u32 %v5406_v22, 16  ;;  %v1574_v40 = vsel %vm5381_vm5, %v1569_v29, %v1573_v10  ;;  %v1671_v43 = vshrl.u32 %v5404_v21, 16  ;;  %v1616_v44 = vor.u32 %v1615_v34, %v1612_v31  ;;  %v5458_v31 = vld [vmem:[#allocation2 + $0x44] sm:$0x1] }
 0x276   : > { %v1608_v42 = vsel %vm5381_vm5, %v1603_v2, %v1607_v30  ;;  %v1584_v50 = vsel %vm5381_vm5, %v1579_v35, %v1583_v14  ;;  %v1621_v53 = vrot.slane %v1619_v36, 5  ;;  %v1636_v60 = vrot.slane %v1634_v11, 4  ;;  %v5442_v11 = vld [vmem:[#allocation2 + $0x3c] sm:$0xf] }
 0x277   : > { %v3797_v52 = vcombine.low %v1598_v19, %v1608_v42  ;;  %v1631_v55 = vrot.slane %v1629_v39, 5  ;;  %v3796_v58 = vcombine.low %v1574_v40, %v1584_v50  ;;  %v1617_v59 = vrot.slane %v1616_v44, 4  ;;  %v5465_v40 = vld [vmem:[#allocation2 + $0x48] sm:$0xf] }
 0x278   : > { %v1639_v61 = vrot.slane %v1637_v48, 5  ;;  %v1626_v62 = vor.u32 %v1625_v25, %v1621_v53  ;;  %v1643_v63 = vshll.u32 %v5387_v7, 16  ;;  %v1649_v2 = vrot.slane %v1647_v18, 4  ;;  %v5448_v18 = vld [vmem:[%s5941_s2] sm:$0xf] }
 0x279   : > { %4288 = vmatprep.mubr.msk.bf16.mxu0 %vm1779_vm2, %v3797_v52  ;;  %v1653_v3 = vshll.u32 %v5429_v45, 16  ;;  %4216 = vmatprep.mubr.msk.bf16.mxu1 %vm1779_vm2, %v3796_v58  ;;  %v1622_v6 = vsel %vm5381_vm5, %v1617_v59, %v1621_v53  ;;  %v2593_v9 = vsel %vm1804_vm1, %v3874_v28, 0  ;;  %v1660_v10 = vrot.slane %v1658_v24, 4 }
 0x27a   : > { %v1640_v8 = vor.u32 %v1639_v61, %v1636_v60  ;;  %4217 = vmatmul.mubr.msk.bf16.vlgmr.msra.gmra.mrb[0].mxu1 %vm1779_vm2, %v3797_v52  ;;  %v1627_v13 = vrot.slane %v1626_v62, 4  ;;  %v1645_v14 = vrot.slane %v1643_v63, 5  ;;  %v1663_v17 = vrot.slane %v1661_v26, 5  ;;  %4595 = vmatprep.subr.msk.bf16.mxu1 %vm1804_vm1, %v5448_v18  ;;  %v5456_v26 = vld [vmem:[#allocation2 + $0x40] sm:$0xf] }
 0x27b   : > { %v1655_v48 = vrot.slane %v1653_v3, 5  ;;  %v1667_v20 = vshll.u32 %v5404_v21, 16  ;;  %v1673_v23 = vrot.slane %v1671_v43, 4  ;;  %v1677_v28 = vshll.u32 %v5436_v5, 16  ;;  %v5471_v52 = vld [vmem:[%s5941_s2 + $0x18] sm:$0xf] }
 0x27c   : > { %v1641_v19 = vrot.slane %v1640_v8, 4  ;;  %v1632_v24 = vsel %vm5381_vm5, %v1627_v13, %v1631_v55  ;;  %v1650_v29 = vor.u32 %v1649_v2, %v1645_v14  ;;  %v1664_v30 = vor.u32 %v1663_v17, %v1660_v10  ;;  %v5484_v63 = vld [vmem:[#allocation2 + $0x4c] sm:$0xf]  ;;  %v5486_v2 = vld [vmem:[#allocation2 + $0x50] sm:$0x1] }
 0x27d   : > { %v1682_v34 = vshrl.u32 %v5442_v11, 16  ;;  %v5461_v35 = vcombine.low %v1622_v6, %v1632_v24  ;;  %v1669_v25 = vrot.slane %v1667_v20, 5  ;;  %v1679_v39 = vrot.slane %v1677_v28, 5 }
 0x27e   : > { %v1646_v36 = vsel %vm5381_vm5, %v1641_v19, %v1645_v14  ;;  %v1651_v42 = vrot.slane %v1650_v29, 4  ;;  %v1665_v43 = vrot.slane %v1664_v30, 4  ;;  %v1685_v50 = vshll.u32 %v5442_v11, 16  ;;  %v5491_v14 = vld [vmem:[#allocation2 + $0x54] sm:$0xf] }
 0x27f   : > { %v1684_v44 = vrot.slane %v1682_v34, 4  ;;  %4220 = vmatprep.mubr.msk.bf16.mxu1 %vm1779_vm2, %v5461_v35  ;;  %4289 = vmatmul.mubr.msk.bf16.vlgmr.msra.gmra.mrb[0].mxu0 %vm1779_vm2, %v5461_v35  ;;  %v1674_v53 = vor.u32 %v1673_v23, %v1669_v25  ;;  %v1691_v55 = vshll.u32 %v5456_v26, 16  ;;  %v1695_v58 = vshrl.u32 %v5456_v26, 16 }
 0x280   : > { %v1701_v59 = vshll.u32 %v5458_v31, 16  ;;  %v1656_v60 = vsel %vm5381_vm5, %v1651_v42, %v1655_v48  ;;  %4305 = vmatpush3.bf16.msra.mxu0 %v2593_v9  ;;  %v1670_v61 = vsel %vm5381_vm5, %v1665_v43, %v1669_v25  ;;  %v1687_v62 = vrot.slane %v1685_v50, 5  ;;  %v5507_v25 = vld [vmem:[#allocation2 + $0x58] sm:$0xf] }
 0x281   : > { %v1706_v3 = vshrl.u32 %v5465_v40, 16  ;;  %v5489_v6 = vcombine.low %v1646_v36, %v1656_v60  ;;  %v1675_v8 = vrot.slane %v1674_v53, 4  ;;  %v1693_v10 = vrot.slane %v1691_v55, 5  ;;  %4601 = vmatprep.subr.msk.bf16.mxu0 %vm1804_vm1, %v5471_v52 }
 0x282   : > { %v1697_v13 = vrot.slane %v1695_v58, 4  ;;  %v1688_v9 = vor.u32 %v1687_v62, %v1684_v44  ;;  %v1703_v48 = vrot.slane %v1701_v59, 5  ;;  %v1709_v19 = vshll.u32 %v5465_v40, 16  ;;  %v5514_v58 = vld [vmem:[#allocation2 + $0x5c] sm:$0x1] }
 0x283   : > { %v1708_v17 = vrot.slane %v1706_v3, 4  ;;  %4221 = vmatmul.mubr.msk.bf16.gmra.mrb[4].mxu1 %vm1779_vm2, %v5489_v6  ;;  %v1680_v20 = vsel %vm5381_vm5, %v1675_v8, %v1679_v39  ;;  %4292 = vmatprep.mubr.msk.bf16.mxu0 %vm1779_vm2, %v5489_v6  ;;  %v1715_v28 = vshll.u32 %v5484_v63, 16  ;;  %v1719_v24 = vshrl.u32 %v5484_v63, 16  ;;  %v5522_v8 = vld [vmem:[#allocation2 + $0x60] sm:$0xf] }
 0x284   : > { %v1698_v23 = vor.u32 %v1697_v13, %v1693_v10  ;;  %v5504_v29 = vcombine.low %v1670_v61, %v1680_v20  ;;  %v1689_v30 = vrot.slane %v1688_v9, 4  ;;  %v1711_v34 = vrot.slane %v1709_v19, 5  ;;  %v5530_v19 = vld [vmem:[%s5941_s2 + $0x8] sm:$0xf] }
 0x285   : > { %v1725_v36 = vshll.u32 %v5486_v2, 16  ;;  %v1717_v43 = vrot.slane %v1715_v28, 5  ;;  %v1721_v44 = vrot.slane %v1719_v24, 4  ;;  %v1730_v39 = vshrl.u32 %v5491_v14, 16  ;;  %v5535_v24 = vld [vmem:[#allocation2 + $0x64] sm:$0xf] }
 0x286   : > { %v1699_v42 = vrot.slane %v1698_v23, 4  ;;  %4224 = vmatprep.mubr.msk.bf16.mxu1 %vm1779_vm2, %v5504_v29  ;;  %v1694_v50 = vsel %vm5381_vm5, %v1689_v30, %v1693_v10  ;;  %v1712_v53 = vor.u32 %v1711_v34, %v1708_v17  ;;  %v1733_v59 = vshll.u32 %v5491_v14, 16 }
 0x287   : > { %v1727_v55 = vrot.slane %v1725_v36, 5  ;;  %4293 = vmatmul.mubr.msk.bf16.gmra.mrb[4].mxu0 %vm1779_vm2, %v5504_v29  ;;  %v1722_v61 = vor.u32 %v1721_v44, %v1717_v43  ;;  %v1732_v62 = vrot.slane %v1730_v39, 4  ;;  %v1739_v3 = vshll.u32 %v5507_v25, 16  ;;  %v5543_v44 = vld [vmem:[#allocation2 + $0x68] sm:$0x1] }
 0x288   : > { %v1704_v60 = vsel %vm5381_vm5, %v1699_v42, %v1703_v48  ;;  %v1713_v10 = vrot.slane %v1712_v53, 4  ;;  %v1735_v9 = vrot.slane %v1733_v59, 5  ;;  %v1743_v17 = vshrl.u32 %v5507_v25, 16 }
 0x289   : > { %v5524_v13 = vcombine.low %v1694_v50, %v1704_v60  ;;  %v1723_v48 = vrot.slane %v1722_v61, 4  ;;  %v1741_v20 = vrot.slane %v1739_v3, 5  ;;  %v1749_v23 = vshll.u32 %v5514_v58, 16 }
 0x28a   : > { %v1970_v28 = vsel %vm1804_vm1, %v5448_v18, 0  ;;  %v2091_v30 = vrot.slane %v2089_v47, 4  ;;  %v1718_v34 = vsel %vm5381_vm5, %v1713_v10, %v1717_v43  ;;  %v1736_v36 = vor.u32 %v1735_v9, %v1732_v62 }
 0x28b   : > { %4296 = vmatprep.mubr.msk.bf16.mxu0 %vm1779_vm2, %v5524_v13  ;;  %v1745_v42 = vrot.slane %v1743_v17, 4  ;;  %4233 = vmatpush3.bf16.msra.mxu1 %v1970_v28  ;;  %v1728_v18 = vsel %vm5381_vm5, %v1723_v48, %v1727_v55  ;;  %v1751_v39 = vrot.slane %v1749_v23, 5  ;;  %v2429_v50 = vshrl.u32 %v5522_v8, 16 }
 0x28c   : > { %4225 = vmatmul.mubr.msk.bf16.gmra.mrb[8].mxu1 %vm1779_vm2, %v5524_v13  ;;  %v2432_v53 = vshll.u32 %v5522_v8, 16  ;;  %4596 = vmatprep.subr.msk.bf16.mxu1 %vm1804_vm1, %v5530_v19  ;;  %v5553_v43 = vcombine.low %v1718_v34, %v1728_v18  ;;  %v1737_v59 = vrot.slane %v1736_v36, 4  ;;  %v2438_v61 = vshll.u32 %v5535_v24, 16 }
 0x28d   : > { %v1746_v60 = vor.u32 %v1745_v42, %v1741_v20  ;;  %v2431_v62 = vrot.slane %v2429_v50, 4  ;;  %v2442_v10 = vshrl.u32 %v5535_v24, 16  ;;  %v2448_v55 = vshll.u32 %v5543_v44, 16 }
 0x28e   : > { %v2434_v3 = vrot.slane %v2432_v53, 5  ;;  %4228 = vmatprep.mubr.msk.bf16.mxu1 %vm1779_vm2, %v5553_v43  ;;  %v1742_v9 = vsel %vm5381_vm5, %v1737_v59, %v1741_v20  ;;  %v2440_v48 = vrot.slane %v2438_v61, 5  ;;  %vm2077_vm6 = vcmask 1042432  }
 0x28f   : > { %v1747_v17 = vrot.slane %v1746_v60, 4  ;;  %4297 = vmatmul.mubr.msk.bf16.gmra.mrb[8].mxu0 %vm1779_vm2, %v5553_v43  ;;  %v2444_v28 = vrot.slane %v2442_v10, 4  ;;  %vm2078_vm7 = vcmask 1046532   ;;  %v2096_v34 = vrot.slane %v5342_v41, 5 }
 0x290   : > { %v2435_v23 = vor.u32 %v2434_v3, %v2431_v62  ;;  %v3812_v42 = vcombine.low %v5361_v51, %v5367_v56  ;;  %vm5569_vm8 = vmor %vm2077_vm6, %vm2078_vm7  ;;  %v2092_v20 = vrot.slane %v5390_v12, 5  ;;  %v2450_v60 = vrot.slane %v2448_v55, 5 }
 0x291   : > { %v1752_v36 = vsel %vm5381_vm5, %v1747_v17, %v1751_v39  ;;  %v2445_v59 = vor.u32 %v2444_v28, %v2440_v48  ;;  %v2090_v41 = vsel %vm5569_vm8, %v3829_v46, %v2089_v47  ;;  %v2103_v61 = vrot.slane %v5387_v7, 5 }
 0x292   : > { %v5574_v50 = vcombine.low %v1742_v9, %v1752_v36  ;;  %v2436_v53 = vrot.slane %v2435_v23, 4  ;;  %v2093_v39 = vsel %vm5569_vm8, %v2091_v30, %v2092_v20  ;;  %v3830_v32 = vrot.slane %v5340_v38, 9 }
 0x293   : > { %v2446_v0 = vrot.slane %v2445_v59, 4  ;;  %v2098_v46 = vrot.slane %v2096_v34, 4  ;;  %v2099_v47 = vrot.slane %v5406_v22, 5  ;;  %v5596_v30 = vcombine.low %v2090_v41, %v2093_v39 }
 0x294   : > { %4229 = vmatmul.mubr.msk.bf16.gmra.mrb[12].mxu1 %vm1779_vm2, %v5574_v50  ;;  %4300 = vmatprep.mubr.msk.bf16.mxu0 %vm1779_vm2, %v5574_v50  ;;  %v2441_v12 = vsel %vm5381_vm5, %v2436_v53, %v2440_v48  ;;  %v3831_v3 = vrot.slane %v5378_v1, 9  ;;  %v2105_v10 = vrot.slane %v2103_v61, 4  ;;  %v2106_v55 = vrot.slane %v5429_v45, 5  ;;  %v3894_v53 = vld [vmem:[%s5941_s2 + $0x1c] sm:$0xf] }
 0x295   : > { %4234 = vmatprep.mubr.msk.bf16.mxu1 %vm1779_vm2, %v3812_v42  ;;  %v2451_v7 = vsel %vm5381_vm5, %v2446_v0, %v2450_v60  ;;  %v2097_v38 = vsel %vm5569_vm8, %v3830_v32, %v2096_v34  ;;  %v2100_v22 = vsel %vm5569_vm8, %v2098_v46, %v2099_v47  ;;  %v2110_v9 = vrot.slane %v5404_v21, 5 }
 0x296   : > { %v5598_v62 = vcombine.low %v2441_v12, %v2451_v7  ;;  %v2104_v1 = vsel %vm5569_vm8, %v3831_v3, %v2103_v61  ;;  %v2107_v45 = vsel %vm5569_vm8, %v2105_v10, %v2106_v55  ;;  %v2117_v17 = vrot.slane %v5456_v26, 5 }
 0x297   : > { %v2187_v48 = vsel %vm1804_vm1, %v5530_v19, 0  ;;  %v5622_v23 = vcombine.low %v2097_v38, %v2100_v22  ;;  %v5624_v21 = vcombine.low %v2104_v1, %v2107_v45  ;;  %v3832_v28 = vrot.slane %v5397_v16, 9 }
 0x298   : > { %4301 = vmatmul.mubr.msk.bf16.gmra.mrb[12].mxu0 %vm1779_vm2, %v5598_v62  ;;  %v2112_v34 = vrot.slane %v2110_v9, 4  ;;  %v2113_v36 = vrot.slane %v5436_v5, 5  ;;  %v2719_v19 = vsel %vm1804_vm1, %v5471_v52, 0  ;;  %v2119_v42 = vrot.slane %v2117_v17, 4 }
 0x299   : > { %4306 = vmatprep.mubr.msk.bf16.mxu0 %vm1779_vm2, %v5596_v30  ;;  %v2120_v20 = vrot.slane %v5458_v31, 5  ;;  %v5639_v16 = vcombine.low %v5522_v8, %v5535_v24  ;;  %v2124_v31 = vrot.slane %v5484_v63, 5  ;;  %v2131_v60 = vrot.slane %v5507_v25, 5 }
 0x29a   : > { %v2114_v5 = vsel %vm5569_vm8, %v2112_v34, %v2113_v36  ;;  %v3834_v39 = vrot.slane %v5465_v40, 9  ;;  %v2127_v0 = vrot.slane %v5486_v2, 5  ;;  %v2082_v32 = vrot.slane %v5367_v56, 5 }
 0x29b   : > { %v2121_v59 = vsel %vm5569_vm8, %v2119_v42, %v2120_v20  ;;  %v2126_v12 = vrot.slane %v2124_v31, 4  ;;  %v3835_v46 = vrot.slane %v5491_v14, 9  ;;  %v2133_v47 = vrot.slane %v2131_v60, 4  ;;  %v1556_v20 = vld [vmem:[#allocation2 + $0x74] sm:$0x1] }
 0x29c   : > { %4235 = vmatmul.mubr.msk.bf16.vlgmr.msra.gmra.mrb[0].mxu1 %vm1779_vm2, %v5338_v37  ;;  %v3833_v37 = vrot.slane %v5442_v11, 9  ;;  %v2134_v7 = vrot.slane %v5514_v58, 5  ;;  %v3817_v3 = vcombine.low %v5442_v11, %v5456_v26  ;;  %v2085_v10 = vrot.slane %v5369_v57, 5 }
 0x29d   : > { %4238 = vmatprep.mubr.msk.bf16.mxu1 %vm1779_vm2, %v5355_v49  ;;  %4251 = vmatpush3.bf16.msra.mxu1 %v2187_v48  ;;  %v3818_v55 = vcombine.low %v5465_v40, %v5484_v63  ;;  %v3828_v2 = vrot.slane %v5361_v51, 9  ;;  %v2125_v56 = vsel %vm5569_vm8, %v3834_v39, %v2124_v31  ;;  %v2128_v58 = vsel %vm5569_vm8, %v2126_v12, %v2127_v0  ;;  %v4714_v39 = vld [vmem:[%s5946_s7] sm:$0xff]  }
 0x29e   : > { %4598 = vmatprep.subr.msk.bf16.mxu1 %vm1804_vm1, %v5319_v54  ;;  %v2111_v54 = vsel %vm5569_vm8, %v3832_v28, %v2110_v9  ;;  %v2118_v52 = vsel %vm5569_vm8, %v3833_v37, %v2117_v17  ;;  %v2084_v11 = vrot.slane %v2082_v32, 4  ;;  %v2579_v57 = vrot.slane %v5535_v24, 5 }
 0x29f   : > { %v5660_v41 = vcombine.low %v2111_v54, %v2114_v5  ;;  %v5663_v61 = vcombine.low %v2118_v52, %v2121_v59  ;;  %v2132_v26 = vsel %vm5569_vm8, %v3835_v46, %v2131_v60  ;;  %v2135_v40 = vsel %vm5569_vm8, %v2133_v47, %v2134_v7  ;;  %v3161_v60 = vld [vmem:[%s5942_s3] sm:$0xf] }
 0x2a0   : > { %4307 = vmatmul.mubr.msk.bf16.vlgmr.msra.gmra.mrb[0].mxu0 %vm1779_vm2, %v5622_v23  ;;  %v5690_v51 = vcombine.low %v2125_v56, %v2128_v58  ;;  %v2083_v63 = vsel %vm5569_vm8, %v3828_v2, %v2082_v32  ;;  %v3873_v38 = vrot.slane %v5522_v8, 9  ;;  %v2086_v24 = vsel %vm5569_vm8, %v2084_v11, %v2085_v10 }
 0x2a1   : > { %4323 = vmatpush3.bf16.msra.mxu0 %v2719_v19  ;;  %4310 = vmatprep.mubr.msk.bf16.mxu0 %vm1779_vm2, %v5624_v21  ;;  %v5697_v22 = vcombine.low %v2132_v26, %v2135_v40  ;;  %v2581_v9 = vrot.slane %v2579_v57, 4  ;;  %v2582_v1 = vrot.slane %v5543_v44, 5  ;;  %v3819_v45 = vcombine.low %v5491_v14, %v5507_v25  ;;  %v3905_v25 = vld [vmem:[%s5941_s2 + $0x20] sm:$0xf] }
 0x2a2   : > { %4602 = vmatprep.subr.msk.bf16.mxu0 %vm1804_vm1, %v3894_v53  ;;  %v3837_v17 = vcombine.low %v2083_v63, %v2086_v24  ;;  %v2580_v8 = vsel %vm5569_vm8, %v3873_v38, %v2579_v57  ;;  %v2867_v14 = vsel %vm1804_vm1, %v3894_v53, 0  ;;  %v2854_v54 = vshll.u32 %v1556_v20, 16  ;;  %v5815_v40 = vld [vmem:[%s5944_s5] ss:$0 sm:$0xff] }
 0x2a3   : > { %v2583_v48 = vsel %vm5569_vm8, %v2581_v9, %v2582_v1  ;;  %vm3367_vm9 = vcmask 130048   ;;  %vm3585_vm10 = vcmask 257024  }
 0x2a4   : > { %4239 = vmatmul.mubr.msk.bf16.gmra.mrb[4].mxu1 %vm1779_vm2, %v5395_v15  ;;  %v5712_v44 = vcombine.low %v2580_v8, %v2583_v48  ;;  %v2856_v31 = vrot.slane %v2854_v54, 5 }
 0x2a5   : > { %4242 = vmatprep.mubr.msk.bf16.mxu1 %vm1779_vm2, %v5414_v27 }
 0x2a8   : > { %4311 = vmatmul.mubr.msk.bf16.gmra.mrb[4].mxu0 %vm1779_vm2, %v5660_v41 }
 0x2a9   : > { %4314 = vmatprep.mubr.msk.bf16.mxu0 %vm1779_vm2, %v5663_v61 }
 0x2ac   : > { %4243 = vmatmul.mubr.msk.bf16.gmra.mrb[8].mxu1 %vm1779_vm2, %v3817_v3 }
 0x2ad   : > { %4246 = vmatprep.mubr.msk.bf16.mxu1 %vm1779_vm2, %v3818_v55 }
 0x2b0   : > { %4315 = vmatmul.mubr.msk.bf16.gmra.mrb[8].mxu0 %vm1779_vm2, %v5690_v51 }
 0x2b1   : > { %4318 = vmatprep.mubr.msk.bf16.mxu0 %vm1779_vm2, %v5697_v22 }
 0x2b4   : > { %4247 = vmatmul.mubr.msk.bf16.gmra.mrb[12].mxu1 %vm1779_vm2, %v3819_v45 }
 0x2b5   : > { %4252 = vmatprep.mubr.msk.bf16.mxu1 %vm1779_vm2, %v3837_v17 }
 0x2b8   : > { %4319 = vmatmul.mubr.msk.bf16.gmra.mrb[12].mxu0 %vm1779_vm2, %v5712_v44 }
 0x2b9   : > { %4324 = vmatprep.mubr.msk.bf16.mxu0 %vm1779_vm2, %v5355_v49  ;;  %v1555_v49 = vld [vmem:[#allocation2 + $0x70] sm:$0xf] }
 0x2ba   : > { %v2848_v34 = vshrl.u32 %v1555_v49, 16  ;;  %v2844_v36 = vshll.u32 %v1555_v49, 16  ;;  %v2985_v4 = vrot.slane %v1555_v49, 5 }
 0x2bc   : > { %4253 = vmatmul.mubr.msk.bf16.vlgmr.msra.gmra.mrb[0].mxu1 %vm1779_vm2, %v5596_v30  ;;  %v2846_v37 = vrot.slane %v2844_v36, 5  ;;  %v2850_v42 = vrot.slane %v2848_v34, 4 }
 0x2bd   : > { %4256 = vmatprep.mubr.msk.bf16.mxu1 %vm1779_vm2, %v5622_v23  ;;  %4417 = vmatpush3.bf16.msra.mxu1 %v5327_v33  ;;  %v1554_v33 = vld [vmem:[#allocation2 + $0x6c] sm:$0xf] }
 0x2be   : > { %v2835_v30 = vshrl.u32 %v1554_v33, 16  ;;  %v2838_v28 = vshll.u32 %v1554_v33, 16  ;;  %v2851_v53 = vor.u32 %v2850_v42, %v2846_v37  ;;  %4604 = vmatprep.subr.msk.bf16.mxu1 %vm1804_vm1, %v3161_v60 }
 0x2c0   : > { %4325 = vmatmul.mubr.msk.bf16.vlgmr.msra.gmra.mrb[0].mxu0 %vm1779_vm2, %v5395_v15  ;;  %v3885_v15 = vcombine.low %v1554_v33, %v1555_v49  ;;  %v2840_v19 = vrot.slane %v2838_v28, 5 }
 0x2c1   : > { %4341 = vmatpush3.bf16.msra.mxu0 %v2867_v14  ;;  %4328 = vmatprep.mubr.msk.bf16.mxu0 %vm1779_vm2, %v5414_v27  ;;  %v2999_v27 = vsel %vm1804_vm1, %v3905_v25, 0 }
 0x2c2   : > { %4603 = vmatprep.subr.msk.bf16.mxu0 %vm1804_vm1, %v3905_v25 }
 0x2c4   : > { %4257 = vmatmul.mubr.msk.bf16.gmra.mrb[4].mxu1 %vm1779_vm2, %v5624_v21 }
 0x2c5   : > { %4260 = vmatprep.mubr.msk.bf16.mxu1 %vm1779_vm2, %v5660_v41 }
 0x2c8   : > { %4329 = vmatmul.mubr.msk.bf16.gmra.mrb[4].mxu0 %vm1779_vm2, %v3817_v3 }
 0x2c9   : > { %4332 = vmatprep.mubr.msk.bf16.mxu0 %vm1779_vm2, %v3818_v55 }
 0x2cc   : > { %4261 = vmatmul.mubr.msk.bf16.gmra.mrb[8].mxu1 %vm1779_vm2, %v5663_v61 }
 0x2cd   : > { %4264 = vmatprep.mubr.msk.bf16.mxu1 %vm1779_vm2, %v5690_v51 }
 0x2d0   : > { %4333 = vmatmul.mubr.msk.bf16.gmra.mrb[8].mxu0 %vm1779_vm2, %v3819_v45 }
 0x2d1   : > { %4336 = vmatprep.mubr.msk.bf16.mxu0 %vm1779_vm2, %v5639_v16 }
 0x2d4   : > { %4265 = vmatmul.mubr.msk.bf16.gmra.mrb[12].mxu1 %vm1779_vm2, %v5697_v22 }
 0x2d5   : > { %4278 = vmatprep.mubr.msk.bf16.mxu1 %vm1779_vm2, %v3817_v3 }
 0x2d8   : > { %4337 = vmatmul.mubr.msk.bf16.gmra.mrb[12].mxu0 %vm1779_vm2, %v3885_v15 }
 0x2d9   : > { %4342 = vmatprep.mubr.msk.bf16.mxu0 %vm1779_vm2, %v5461_v35  ;;  %v2837_v35 = vrot.slane %v2835_v30, 4 }
 0x2dc   : > { %4279 = vmatmul.mubr.msk.bf16.vlgmr.msra.gmra.mrb[8].mxu1 %vm1779_vm2, %v3818_v55 }
 0x2dd   : > { %4282 = vmatprep.mubr.msk.bf16.mxu1 %vm1779_vm2, %v3819_v45 }
 0x2e0   : > { %4343 = vmatmul.mubr.msk.bf16.vlgmr.msra.gmra.mrb[0].mxu0 %vm1779_vm2, %v5489_v6  ;;  %v2841_v6 = vor.u32 %v2840_v19, %v2837_v35 }
 0x2e1   : > { %4359 = vmatpush3.bf16.msra.mxu0 %v2999_v27  ;;  %4346 = vmatprep.mubr.msk.bf16.mxu0 %vm1779_vm2, %v5504_v29  ;;  %v2852_v29 = vrot.slane %v2851_v53, 4 }
 0x2e2   : > { %v2842_v5 = vrot.slane %v2841_v6, 4 }
 0x2e4   : > { %4283 = vmatmul.mubr.msk.bf16.gmra.mrb[12].mxu1 %vm1779_vm2, %v5639_v16  ;;  %v2847_v16 = vsel %vm5381_vm5, %v2842_v5, %v2846_v37 }
 0x2e8   : > { %4347 = vmatmul.mubr.msk.bf16.gmra.mrb[4].mxu0 %vm1779_vm2, %v5524_v13  ;;  %v2857_v13 = vsel %vm5381_vm5, %v2852_v29, %v2856_v31 }
 0x2e9   : > { %4350 = vmatprep.mubr.msk.bf16.mxu0 %vm1779_vm2, %v5553_v43  ;;  %v3895_v52 = vcombine.low %v2847_v16, %v2857_v13  ;;  %v3904_v43 = vrot.slane %v1554_v33, 9 }
 0x2f0   : > { %4351 = vmatmul.mubr.msk.bf16.gmra.mrb[8].mxu0 %vm1779_vm2, %v5574_v50  ;;  %v2987_v50 = vrot.slane %v2985_v4, 4 }
 0x2f1   : > { %4354 = vmatprep.mubr.msk.bf16.mxu0 %vm1779_vm2, %v5598_v62  ;;  %v2988_v62 = vrot.slane %v1556_v20, 5 }
 0x2f8   : > { %4355 = vmatmul.mubr.msk.bf16.gmra.mrb[12].mxu0 %vm1779_vm2, %v3895_v52 }
 0x2f9   : > { %4360 = vmatprep.mubr.msk.bf16.mxu0 %vm1779_vm2, %v5622_v23  ;;  %v2986_v23 = vsel %vm5569_vm8, %v3904_v43, %v2985_v4 }
 0x300   : > { %4361 = vmatmul.mubr.msk.bf16.vlgmr.msra.gmra.mrb[0].mxu0 %vm1779_vm2, %v5624_v21  ;;  %v2989_v21 = vsel %vm5569_vm8, %v2987_v50, %v2988_v62 }
 0x301   : > { %4364 = vmatprep.mubr.msk.bf16.mxu0 %vm1779_vm2, %v5660_v41  ;;  %v3906_v59 = vcombine.low %v2986_v23, %v2989_v21  ;;  %v3194_v41 = vsel %vm1804_vm1, %v3161_v60, 0 }
 0x302   : > { %4377 = vmatpush3.bf16.msra.mxu1 %v3194_v41 }
 0x303   : > { %4394 = vmatprep.subr.bf16.mxu1 %v4714_v39 }
 0x308   : > { %4365 = vmatmul.mubr.msk.bf16.gmra.mrb[4].mxu0 %vm1779_vm2, %v5663_v61 }
 0x309   : > { %4368 = vmatprep.mubr.msk.bf16.mxu0 %vm1779_vm2, %v5690_v51 }
 0x310   : > { %4369 = vmatmul.mubr.msk.bf16.gmra.mrb[8].mxu0 %vm1779_vm2, %v5697_v22 }
 0x311   : > { %4372 = vmatprep.mubr.msk.bf16.mxu0 %vm1779_vm2, %v5712_v44 }
 0x318   : > { %4373 = vmatmul.mubr.msk.bf16.gmra.mrb[12].mxu0 %vm1779_vm2, %v3906_v59 }
 0x38f   : > { %v4254_v18 = vpop.f32.mrb[0].mxu1 }
 0x390   : > { %v2223_v61 = vpop.f32.mrb[1].mxu1 }
 0x391   : > { %v4255_v12 = vpop.f32.mrb[2].mxu1 }
 0x392   : > { %v2226_v0 = vpop.f32.mrb[3].mxu1 }
 0x397   : > { %v4258_v32 = vpop.f32.mrb[4].mxu1 }
 0x398   : > { %v2239_v46 = vpop.f32.mrb[5].mxu1 }
 0x399   : > { %v4259_v47 = vpop.f32.mrb[6].mxu1 }
 0x39a   : > { %v2242_v7 = vpop.f32.mrb[7].mxu1 }
 0x3af   : > { %v4280_v3 = vpop.f32.mrb[8].mxu1 }
 0x3b0   : > { %v2381_v10 = vpop.f32.mrb[9].mxu1 }
 0x3b1   : > { %v4281_v55 = vpop.f32.mrb[10].mxu1 }
 0x3b2   : > { %v2384_v2 = vpop.f32.mrb[11].mxu1 }
 0x3b7   : > { %v5804_v56 = vpop.f32.mrb[12].mxu1 }
 0x3b8   : > { %v5806_v58 = vpop.f32.mrb[13].mxu1 }
 0x3b9   : > { %v5808_v11 = vpop.f32.mrb[14].mxu1 }
 0x3ba   : > { %v5810_v57 = vpop.f32.mrb[15].mxu1 }
 0x3d3   : > { %v4362_v26 = vpop.f32.mrb[0].mxu0 }
 0x3d4   : > { %v4418_v51 = vadd.f32 %v4362_v26, %v4254_v18  ;;  %v3035_v63 = vpop.f32.mrb[1].mxu0 }
 0x3d5   : > { %v4419_v38 = vadd.f32 %v3035_v63, %v2223_v61  ;;  %v4363_v24 = vpop.f32.mrb[2].mxu0 }
 0x3d6   : > { %v3123_v22 = vadd.f32 %v4418_v51, %v5815_v40  ;;  %v4420_v9 = vadd.f32 %v4363_v24, %v4255_v12  ;;  %v3038_v1 = vpop.f32.mrb[3].mxu0 }
 0x3d7   : > { %v3121_v45 = vadd.f32 %v4419_v38, %v5815_v40  ;;  %v4421_v17 = vadd.f32 %v3038_v1, %v2226_v0 }
 0x3d8   : > { %v3124_v8 = vadd.f32 %v4420_v9, %v5815_v40  ;;  %v3139_v44 = vmax.f32 %v3123_v22, 0.0 }
 0x3d9   : > { %v3122_v48 = vadd.f32 %v4421_v17, %v5815_v40  ;;  %v3137_v25 = vmax.f32 %v3121_v45, 0.0  ;;  %v4715_v17 = vld [vmem:[%s5802_s25] sm:$0xff]  }
 0x3da   : > { %v3140_v14 = vmax.f32 %v3124_v8, 0.0  ;;  %v4717_v8 = vld [vmem:[%s5802_s25 + $0x10] sm:$0xff]  }
 0x3db   : > { %v3138_v33 = vmax.f32 %v3122_v48, 0.0  ;;  %v4366_v49 = vpop.f32.mrb[4].mxu0  ;;  %v4718_v48 = vld [vmem:[%s5802_s25 + $0x18] sm:$0xff]  }
 0x3dc   : > { %v3154_v15 = vpack.c.bf16 %v3140_v14, %v3139_v44  ;;  %v4422_v27 = vadd.f32 %v4366_v49, %v4258_v32  ;;  %v3051_v30 = vpop.f32.mrb[5].mxu0  ;;  %v4719_v44 = vld [vmem:[%s5802_s25 + $0x20] sm:$0xff]   ;;  %v4720_v14 = vld [vmem:[%s5802_s25 + $0x28] sm:$0xff]  }
 0x3dd   : > { %v3153_v28 = vpack.c.bf16 %v3138_v33, %v3137_v25  ;;  %v4423_v34 = vadd.f32 %v3051_v30, %v2239_v46  ;;  %v4367_v36 = vpop.f32.mrb[6].mxu0  ;;  %v4721_v25 = vld [vmem:[%s5802_s25 + $0x30] sm:$0xff]   ;;  %v4722_v33 = vld [vmem:[%s5802_s25 + $0x38] sm:$0xff]   ;;  %v3916_v49 = vld [vmem:[%s5945_s6] ss:$0 sm:$0xff] }
 0x3de   : > { %v3127_v35 = vadd.f32 %v4422_v27, %v5815_v40  ;;  %v4424_v19 = vadd.f32 %v4367_v36, %v4259_v47  ;;  %v3054_v37 = vpop.f32.mrb[7].mxu0 }
 0x3df   : > { %v3125_v42 = vadd.f32 %v4423_v34, %v5815_v40  ;;  %v4425_v20 = vadd.f32 %v3054_v37, %v2242_v7  ;;  %4378 = vmatprep.mubr.msk.bf16.mxu1 %vm1779_vm2, %v3153_v28 }
 0x3e0   : > { %v3128_v6 = vadd.f32 %v4424_v19, %v5815_v40  ;;  %4379 = vmatmul.mubr.msk.bf16.vlgmr.msra.gmra.mrb[16].mxu1 %vm1779_vm2, %v3154_v15  ;;  %v3143_v54 = vmax.f32 %v3127_v35, 0.0  ;;  %v3927_v15 = vld [vmem:[%s5947_s8] ss:$0 sm:$0xff] }
 0x3e1   : > { %v3126_v53 = vadd.f32 %v4425_v20, %v5815_v40  ;;  %4395 = vmatpush3.bf16.msra.mxu1 %v4714_v39  ;;  %v3141_v29 = vmax.f32 %v3125_v42, 0.0  ;;  %v5867_v27 = vadd.f32 %v3927_v15, %v3916_v49 }
 0x3e2   : > { %v3144_v5 = vmax.f32 %v3128_v6, 0.0 }
 0x3e3   : > { %v3142_v31 = vmax.f32 %v3126_v53, 0.0  ;;  %v4370_v16 = vpop.f32.mrb[8].mxu0 }
 0x3e4   : > { %v3156_v13 = vpack.c.bf16 %v3144_v5, %v3143_v54  ;;  %v4426_v52 = vadd.f32 %v4370_v16, %v4280_v3  ;;  %v3067_v4 = vpop.f32.mrb[9].mxu0 }
 0x3e5   : > { %v3155_v43 = vpack.c.bf16 %v3142_v31, %v3141_v29  ;;  %v4427_v50 = vadd.f32 %v3067_v4, %v2381_v10  ;;  %v4371_v62 = vpop.f32.mrb[10].mxu0 }
 0x3e6   : > { %v3131_v23 = vadd.f32 %v4426_v52, %v5815_v40  ;;  %v4428_v21 = vadd.f32 %v4371_v62, %v4281_v55  ;;  %v3070_v59 = vpop.f32.mrb[11].mxu0 }
 0x3e7   : > { %v3129_v60 = vadd.f32 %v4427_v50, %v5815_v40  ;;  %v4429_v41 = vadd.f32 %v3070_v59, %v2384_v2  ;;  %4382 = vmatprep.mubr.msk.bf16.mxu1 %vm1779_vm2, %v3155_v43 }
 0x3e8   : > { %v3132_v39 = vadd.f32 %v4428_v21, %v5815_v40  ;;  %4383 = vmatmul.mubr.msk.bf16.gmra.mrb[20].mxu1 %vm1779_vm2, %v3156_v13  ;;  %v3147_v61 = vmax.f32 %v3131_v23, 0.0 }
 0x3e9   : > { %v3130_v18 = vadd.f32 %v4429_v41, %v5815_v40  ;;  %v3145_v0 = vmax.f32 %v3129_v60, 0.0 }
 0x3ea   : > { %v3148_v12 = vmax.f32 %v3132_v39, 0.0 }
 0x3eb   : > { %v3146_v32 = vmax.f32 %v3130_v18, 0.0  ;;  %v4374_v46 = vpop.f32.mrb[12].mxu0 }
 0x3ec   : > { %v3158_v47 = vpack.c.bf16 %v3148_v12, %v3147_v61  ;;  %v4430_v7 = vadd.f32 %v4374_v46, %v5804_v56  ;;  %v3083_v3 = vpop.f32.mrb[13].mxu0 }
 0x3ed   : > { %v3157_v10 = vpack.c.bf16 %v3146_v32, %v3145_v0  ;;  %v4431_v55 = vadd.f32 %v3083_v3, %v5806_v58  ;;  %v4375_v2 = vpop.f32.mrb[14].mxu0 }
 0x3ee   : > { %v3135_v26 = vadd.f32 %v4430_v7, %v5815_v40  ;;  %v4432_v51 = vadd.f32 %v4375_v2, %v5808_v11  ;;  %v3086_v63 = vpop.f32.mrb[15].mxu0 }
 0x3ef   : > { %v3133_v38 = vadd.f32 %v4431_v55, %v5815_v40  ;;  %v4433_v24 = vadd.f32 %v3086_v63, %v5810_v57  ;;  %4386 = vmatprep.mubr.msk.bf16.mxu1 %vm1779_vm2, %v3157_v10 }
 0x3f0   : > { %v3136_v56 = vadd.f32 %v4432_v51, %v5815_v40  ;;  %4387 = vmatmul.mubr.msk.bf16.gmra.mrb[24].mxu1 %vm1779_vm2, %v3158_v47  ;;  %v3151_v22 = vmax.f32 %v3135_v26, 0.0 }
 0x3f1   : > { %v3134_v58 = vadd.f32 %v4433_v24, %v5815_v40  ;;  %v3149_v11 = vmax.f32 %v3133_v38, 0.0  ;;  %v4716_v40 = vld [vmem:[%s5802_s25 + $0x8] sm:$0xff]  }
 0x3f2   : > { %v3152_v9 = vmax.f32 %v3136_v56, 0.0 }
 0x3f3   : > { %v3150_v1 = vmax.f32 %v3134_v58, 0.0 }
 0x3f4   : > { %v3160_v45 = vpack.c.bf16 %v3152_v9, %v3151_v22 }
 0x3f5   : > { %v3159_v57 = vpack.c.bf16 %v3150_v1, %v3149_v11 }
 0x3f7   : > { %4390 = vmatprep.mubr.msk.bf16.mxu1 %vm1779_vm2, %v3159_v57 }
 0x3f8   : > { %4391 = vmatmul.mubr.msk.bf16.gmra.mrb[28].mxu1 %vm1779_vm2, %v3160_v45 }
 0x3f9   : > { %4396 = vmatprep.mubr.msk.bf16.mxu1 %vm3367_vm9, %v4715_v17 }
 0x400   : > { %4397 = vmatmul.mubr.msk.bf16.vlgmr.msra.gmra.mrb[16].mxu1 %vm3367_vm9, %v4716_v40 }
 0x401   : > { %4400 = vmatprep.mubr.msk.bf16.mxu1 %vm3367_vm9, %v4717_v8 }
 0x408   : > { %4401 = vmatmul.mubr.msk.bf16.gmra.mrb[20].mxu1 %vm3367_vm9, %v4718_v48 }
 0x409   : > { %4404 = vmatprep.mubr.msk.bf16.mxu1 %vm3367_vm9, %v4719_v44 }
 0x410   : > { %4405 = vmatmul.mubr.msk.bf16.gmra.mrb[24].mxu1 %vm3367_vm9, %v4720_v14 }
 0x411   : > { %4408 = vmatprep.mubr.msk.bf16.mxu1 %vm3367_vm9, %v4721_v25 }
 0x418   : > { %4409 = vmatmul.mubr.msk.bf16.gmra.mrb[28].mxu1 %vm3367_vm9, %v4722_v33 }
 0x4d3   : > { %v4398_v30 = vpop.f32.mrb[16].mxu1 }
 0x4d4   : > { %v4434_v28 = vadd.f32 %v4398_v30, %v3916_v49  ;;  %v3426_v34 = vpop.f32.mrb[17].mxu1 }
 0x4d5   : > { %v4436_v36 = vadd.f32 %v3916_v49, %v3426_v34  ;;  %v4399_v35 = vpop.f32.mrb[18].mxu1 }
 0x4d6   : > { %v4435_v19 = vadd.f32 %v4434_v28, %v3927_v15  ;;  %v4439_v37 = vadd.f32 %v5867_v27, %v4399_v35  ;;  %v3429_v42 = vpop.f32.mrb[19].mxu1 }
 0x4d7   : > { %v4437_v20 = vadd.f32 %v4436_v36, %v3927_v15  ;;  %v4441_v6 = vadd.f32 %v5867_v27, %v3429_v42 }
 0x4d8   : > { %v3507_v53 = vmax.f32 %v4435_v19, 0.0  ;;  %v3508_v54 = vmax.f32 %v4439_v37, 0.0 }
 0x4d9   : > { %v3505_v5 = vmax.f32 %v4437_v20, 0.0  ;;  %v3506_v29 = vmax.f32 %v4441_v6, 0.0 }
 0x4da   : > { %v4005_v31 = vpack.c.bf16 %v3507_v53, %v3507_v53  ;;  %v4006_v16 = vpack.c.bf16 %v3508_v54, %v3508_v54 }
 0x4db   : > { %v4003_v13 = vpack.c.bf16 %v3505_v5, %v3505_v5  ;;  %v4004_v52 = vpack.c.bf16 %v3506_v29, %v3506_v29  ;;  %v4402_v4 = vpop.f32.mrb[20].mxu1 }
 0x4dc   : > { %3588 = vst.msk [vmem:[%s5010_s23 + $0x8] sm:$0xf] %vm3585_vm10, %v4005_v31  ;;  %3589 = vst.msk [vmem:[%s5010_s23 + $0xc] sm:$0xf] %vm3585_vm10, %v4006_v16  ;;  %v4443_v43 = vadd.f32 %v5867_v27, %v4402_v4  ;;  %v3442_v50 = vpop.f32.mrb[21].mxu1 }
 0x4dd   : > { %3586 = vst.msk [vmem:[%s5010_s23] sm:$0xf] %vm3585_vm10, %v4003_v13  ;;  %3587 = vst.msk [vmem:[%s5010_s23 + $0x4] sm:$0xf] %vm3585_vm10, %v4004_v52  ;;  %v4445_v62 = vadd.f32 %v5867_v27, %v3442_v50  ;;  %v4403_v23 = vpop.f32.mrb[22].mxu1 }
 0x4de   : > { %v3511_v21 = vmax.f32 %v4443_v43, 0.0  ;;  %v4447_v59 = vadd.f32 %v5867_v27, %v4403_v23  ;;  %v3445_v60 = vpop.f32.mrb[23].mxu1 }
 0x4df   : > { %v3509_v41 = vmax.f32 %v4445_v62, 0.0  ;;  %v4449_v39 = vadd.f32 %v5867_v27, %v3445_v60 }
 0x4e0   : > { %v4009_v18 = vpack.c.bf16 %v3511_v21, %v3511_v21  ;;  %v3512_v61 = vmax.f32 %v4447_v59, 0.0 }
 0x4e1   : > { %v4007_v12 = vpack.c.bf16 %v3509_v41, %v3509_v41  ;;  %v3510_v0 = vmax.f32 %v4449_v39, 0.0 }
 0x4e2   : > { %3592 = vst.msk [vmem:[%s5010_s23 + $0x18] sm:$0xf] %vm3585_vm10, %v4009_v18  ;;  %v4010_v32 = vpack.c.bf16 %v3512_v61, %v3512_v61 }
 0x4e3   : > { %3590 = vst.msk [vmem:[%s5010_s23 + $0x10] sm:$0xf] %vm3585_vm10, %v4007_v12  ;;  %v4008_v46 = vpack.c.bf16 %v3510_v0, %v3510_v0  ;;  %v4406_v47 = vpop.f32.mrb[24].mxu1 }
 0x4e4   : > { %3593 = vst.msk [vmem:[%s5010_s23 + $0x1c] sm:$0xf] %vm3585_vm10, %v4010_v32  ;;  %v4451_v7 = vadd.f32 %v5867_v27, %v4406_v47  ;;  %v3458_v3 = vpop.f32.mrb[25].mxu1 }
 0x4e5   : > { %3591 = vst.msk [vmem:[%s5010_s23 + $0x14] sm:$0xf] %vm3585_vm10, %v4008_v46  ;;  %v4453_v10 = vadd.f32 %v5867_v27, %v3458_v3  ;;  %v4407_v55 = vpop.f32.mrb[26].mxu1 }
 0x4e6   : > { %v3515_v2 = vmax.f32 %v4451_v7, 0.0  ;;  %v4455_v26 = vadd.f32 %v5867_v27, %v4407_v55  ;;  %v3461_v51 = vpop.f32.mrb[27].mxu1 }
 0x4e7   : > { %v3513_v63 = vmax.f32 %v4453_v10, 0.0  ;;  %v4457_v38 = vadd.f32 %v5867_v27, %v3461_v51 }
 0x4e8   : > { %v4013_v24 = vpack.c.bf16 %v3515_v2, %v3515_v2  ;;  %v3516_v56 = vmax.f32 %v4455_v26, 0.0 }
 0x4e9   : > { %v4011_v58 = vpack.c.bf16 %v3513_v63, %v3513_v63  ;;  %v3514_v22 = vmax.f32 %v4457_v38, 0.0 }
 0x4ea   : > { %3596 = vst.msk [vmem:[%s5010_s23 + $0x28] sm:$0xf] %vm3585_vm10, %v4013_v24  ;;  %v4014_v9 = vpack.c.bf16 %v3516_v56, %v3516_v56 }
 0x4eb   : > { %3594 = vst.msk [vmem:[%s5010_s23 + $0x20] sm:$0xf] %vm3585_vm10, %v4011_v58  ;;  %v4012_v11 = vpack.c.bf16 %v3514_v22, %v3514_v22  ;;  %v4410_v1 = vpop.f32.mrb[28].mxu1 }
 0x4ec   : > { %3597 = vst.msk [vmem:[%s5010_s23 + $0x2c] sm:$0xf] %vm3585_vm10, %v4014_v9  ;;  %v4459_v45 = vadd.f32 %v5867_v27, %v4410_v1  ;;  %v3474_v57 = vpop.f32.mrb[29].mxu1 }
 0x4ed   : > { %3595 = vst.msk [vmem:[%s5010_s23 + $0x24] sm:$0xf] %vm3585_vm10, %v4012_v11  ;;  %v4461_v17 = vadd.f32 %v5867_v27, %v3474_v57  ;;  %v4411_v40 = vpop.f32.mrb[30].mxu1 }
 0x4ee   : > { %v3519_v8 = vmax.f32 %v4459_v45, 0.0  ;;  %v4463_v48 = vadd.f32 %v5867_v27, %v4411_v40  ;;  %v3477_v44 = vpop.f32.mrb[31].mxu1 }
 0x4ef   : > { %v3517_v14 = vmax.f32 %v4461_v17, 0.0  ;;  %v4465_v25 = vadd.f32 %v5867_v27, %v3477_v44 }
 0x4f0   : > { %v4017_v33 = vpack.c.bf16 %v3519_v8, %v3519_v8  ;;  %v3520_v49 = vmax.f32 %v4463_v48, 0.0 }
 0x4f1   : > { %v4015_v15 = vpack.c.bf16 %v3517_v14, %v3517_v14  ;;  %v3518_v30 = vmax.f32 %v4465_v25, 0.0 }
 0x4f2   : > { %3600 = vst.msk [vmem:[%s5010_s23 + $0x38] sm:$0xf] %vm3585_vm10, %v4017_v33  ;;  %v4018_v28 = vpack.c.bf16 %v3520_v49, %v3520_v49 }
 0x4f3   : > { %3598 = vst.msk [vmem:[%s5010_s23 + $0x30] sm:$0xf] %vm3585_vm10, %v4015_v15  ;;  %v4016_v34 = vpack.c.bf16 %v3518_v30, %v3518_v30 }
 0x4f4   : > { %3601 = vst.msk [vmem:[%s5010_s23 + $0x3c] sm:$0xf] %vm3585_vm10, %v4018_v28 }
 0x4f5   : > { %3599 = vst.msk [vmem:[%s5010_s23 + $0x34] sm:$0xf] %vm3585_vm10, %v4016_v34 }
 0x4f6 PF: > { %s22_s16 = sadd.s32 1, %s4819_s16   ;;  %s5971_s29 = sld [smem:[#allocation6_spill]] }
 0x4f7   : > { %p19_p8 = scmp.ge.s32.totalorder %s22_s16, 6   ;;  %s5972_s24 = sld [smem:[#allocation7_spill]] }
 0x4f8   : > { %s5973_s30 = smov %s4795_s10  ;;  %s5974_s10 = smov %s4799_s11 }
 0x4f9   : > { %s5975_s11 = smov %s4945_s27  ;;  %s5976_s12 = smov %s4811_s14 }
 0x4fa   : > { %s5977_s13 = smov %s4815_s15  ;;  %21 = sbr.rel (!%p19_p8) target bundleno = 5 (0x5), region = 116 }
 0x4fc   : > { %s5978_s14 = smov %s5971_s29 }
 0x4fd   : > { %s5979_s15 = smov %s5972_s24 }
 0x501   :  { %3632 = vsyncpa [#allocation4], 1 }
 0x502   :  { %3634 = vsyncpa [#allocation4 + $0x1], 1 }

</bundles_post_ra>
